<compile_context>
chip_gen: v6e
topology: v6e:2x2x1
jax: 0.10.0
libtpu: 0.0.40
codegen_flags: <defaults>
</compile_context>

<pallas_src>
import functools

import jax
import jax.numpy as jnp
import numpy as np
from jax.experimental import pallas as pl
from jax.experimental.pallas import tpu as pltpu


def _ln(x, g, b, eps):
    mu = jnp.mean(x, axis=-1, keepdims=True)
    var = jnp.mean((x - mu) ** 2, axis=-1, keepdims=True)
    return (x - mu) * jax.lax.rsqrt(var + eps) * g + b


# --------------------------- fused decoder kernel ----------------------------
def decoder_kernel(src_ref, mask_ref, asel_ref, aselT_ref,
                   ga_ref, ba_ref, wk_ref, bk_ref, wv_ref, bv_ref,
                   wq_ref, bq_ref, wf_ref, bf_ref, gm_ref, bm_ref,
                   gf_ref, bgf_ref, w1_ref, b1_ref, w2_ref, b2_ref,
                   gl_ref, bl_ref, out_ref, seqs_scr, *,
                   H, dph, scale, nlayers):
    lidx = pl.program_id(1)                        # layer index ("arbitrary" axis)

    @pl.when(lidx == 0)
    def _():                                       # emb_dropout = identity in eval
        seqs_scr[...] = src_ref[0]

    x = seqs_scr[...]                              # running seqs, (L, D), VMEM-resident
    qn = _ln(x, ga_ref[0], ba_ref[0], 1e-8)        # Q = attention_layernorm(seqs)

    # MHA is called as (key=Q, value=seqs, query=seqs)
    k = jnp.dot(qn, wk_ref[0], preferred_element_type=jnp.float32) + bk_ref[0]
    v = jnp.dot(x, wv_ref[0], preferred_element_type=jnp.float32) + bv_ref[0]
    q = jnp.dot(x, wq_ref[0], preferred_element_type=jnp.float32) + bq_ref[0]

    # torch's `.view(B*H, -1, dph)` on a contiguous (B, L, D) tensor is the flat
    # reinterpretation  Xf[m, r] = X[m // H, (m % H)*dph + r].  Reproduce it in
    # VMEM with constant 0/1 selector matmuls (asel[c][m, l] = [m == l*H + c]).
    def to_flat_heads(t):
        acc = None
        for c in range(H):
            piece = jnp.dot(asel_ref[c], t[:, c * dph:(c + 1) * dph],
                            preferred_element_type=jnp.float32)
            acc = piece if acc is None else acc + piece
        return acc                                 # (L*H, dph)

    qf = to_flat_heads(q)
    kf = to_flat_heads(k)
    vf = to_flat_heads(v)

    # all H heads at once: lane-dense (L*H, L*H) block-diagonal scores.
    s = jax.lax.dot_general(qf, kf, (((1,), (1,)), ((), ())),
                            preferred_element_type=jnp.float32) * scale
    s = jnp.where(mask_ref[...] != 0, -100000000.0, s)   # masked_fill_ (+ cross-head kill)
    s = s - jnp.max(s, axis=-1, keepdims=True)
    p = jnp.exp(s)
    p = p * pl.reciprocal(jnp.sum(p, axis=-1, keepdims=True), approx=True)
    cf = jnp.dot(p, vf, preferred_element_type=jnp.float32)          # (L*H, dph)

    # undo the head view, folded into the output projection:
    #   out = ctx @ WfT + bf   with   ctx[l, c*dph + r] = cf[l*H + c, r]
    wfT = wf_ref[0]
    out = bf_ref[0]
    for c in range(H):
        rows = jnp.dot(aselT_ref[c], cf, preferred_element_type=jnp.float32)  # (L, dph)
        out = out + jnp.dot(rows, wfT[c * dph:(c + 1) * dph, :],
                            preferred_element_type=jnp.float32)

    mha = _ln(x + out, gm_ref[0], bm_ref[0], 1e-5)        # MHA internal LN (eps=1e-5)
    s2 = _ln(qn + mha, gf_ref[0], bgf_ref[0], 1e-8)       # seqs = Q + mha; forward_layernorm
    h = jnp.maximum(
        jnp.dot(s2, w1_ref[0], preferred_element_type=jnp.float32) + b1_ref[0], 0.0)
    y = jnp.dot(h, w2_ref[0], preferred_element_type=jnp.float32) + b2_ref[0]
    seqs_scr[...] = y                                     # carry to next layer (VMEM only)

    @pl.when(lidx == nlayers - 1)
    def _():                                              # last_layernorm, single HBM write
        out_ref[0] = _ln(y, gl_ref[...], bl_ref[...], 1e-8)


# --------------------------- Decoder forward (Pallas) ------------------------
def decoder_forward(params, src, attention_mask):
    B, L, D = src.shape
    H = int(params["nhead"])
    dph = D // H
    LH = L * H
    nlayers = params["wk"].shape[0]
    scale = float(dph // H) ** (-0.5)     # matches (key.size(-1) // num_heads) ** -0.5

    # small constant operands (built once in plain JAX; no activation-sized work)
    mrow = jnp.arange(LH)
    blk_mask = (mrow[:, None] // L) != (mrow[None, :] // L)                 # cross-head
    attn_tiled = jnp.tile(attention_mask.astype(jnp.float32) != 0, (H, H))  # [m1%L, m2%L]
    full_mask = (blk_mask | attn_tiled).astype(jnp.float32)                 # (LH, LH)

    ll = jnp.arange(L)
    asel = jnp.stack([(mrow[:, None] == (ll[None, :] * H + c)).astype(jnp.float32)
                      for c in range(H)])                                   # (H, LH, L)
    aselT = jnp.transpose(asel, (0, 2, 1))                                  # (H, L, LH)

    kernel = functools.partial(decoder_kernel, H=H, dph=dph,
                               scale=scale, nlayers=nlayers)

    lay = lambda x, y: pl.BlockSpec((1, x, y), lambda b, l: (l, 0, 0))
    act = pl.BlockSpec((1, L, D), lambda b, l: (b, 0, 0))

    in_specs = [
        act,                                                  # src
        pl.BlockSpec((LH, LH), lambda b, l: (0, 0)),          # full mask
        pl.BlockSpec((H, LH, L), lambda b, l: (0, 0, 0)),     # asel
        pl.BlockSpec((H, L, LH), lambda b, l: (0, 0, 0)),     # aselT
        lay(1, D), lay(1, D),                                 # ga, ba
        lay(D, D), lay(1, D),                                 # wk, bk
        lay(D, D), lay(1, D),                                 # wv, bv
        lay(D, D), lay(1, D),                                 # wq, bq
        lay(D, D), lay(1, D),                                 # wf, bf
        lay(1, D), lay(1, D),                                 # gm, bm
        lay(1, D), lay(1, D),                                 # gf, bgf
        lay(D, 4 * D), lay(1, 4 * D),                         # w1, b1
        lay(4 * D, D), lay(1, D),                             # w2, b2
        pl.BlockSpec((1, D), lambda b, l: (0, 0)),            # gl (last LN weight)
        pl.BlockSpec((1, D), lambda b, l: (0, 0)),            # bl (last LN bias)
    ]

    return pl.pallas_call(
        kernel,
        grid=(B, nlayers),
        in_specs=in_specs,
        out_specs=act,
        out_shape=jax.ShapeDtypeStruct((B, L, D), jnp.float32),
        scratch_shapes=[pltpu.VMEM((L, D), jnp.float32)],
        compiler_params=pltpu.CompilerParams(
            dimension_semantics=("parallel", "arbitrary"),
            vmem_limit_bytes=32 * 1024 * 1024),
    )(src, full_mask, asel, aselT,
      params["ga"], params["ba"],
      params["wk"], params["bk"], params["wv"], params["bv"],
      params["wq"], params["bq"], params["wf"], params["bf"],
      params["gm"], params["bm"], params["gf"], params["bgf"],
      params["w1"], params["b1"], params["w2"], params["b2"],
      params["gl"], params["bl"])


# --------------------------- parameter init (synthetic) ----------------------
def init_params(key, ninp, nhead, nlayers):
    D = ninp

    def lin(k, din, dout):
        k1, k2 = jax.random.split(k)
        w = jax.random.normal(k1, (dout, din), jnp.float32) * 0.05   # torch (out, in)
        b = jax.random.normal(k2, (1, dout), jnp.float32) * 0.05
        return w.T, b                                                # -> (in, out)

    names = ["wk", "wv", "wq", "wf", "w1", "w2"]
    dims = [(D, D), (D, D), (D, D), (D, D), (D, 4 * D), (4 * D, D)]
    ws = {n: [] for n in names}
    bs = {n: [] for n in names}
    keys = jax.random.split(key, nlayers)
    for i in range(nlayers):
        ks = jax.random.split(keys[i], len(names))
        for n, (din, dout), kk in zip(names, dims, ks):
            wt, bt = lin(kk, din, dout)
            ws[n].append(wt)
            bs[n].append(bt)

    ones = jnp.ones((nlayers, 1, D), jnp.float32)
    zeros = jnp.zeros((nlayers, 1, D), jnp.float32)
    return dict(
        nhead=nhead,
        ga=ones, ba=zeros,            # attention_layernorms (eps=1e-8)
        gm=ones, bm=zeros,            # MHA internal layer_norm (eps=1e-5)
        gf=ones, bgf=zeros,           # forward_layernorms (eps=1e-8)
        wk=jnp.stack(ws["wk"]), bk=jnp.stack(bs["wk"]),
        wv=jnp.stack(ws["wv"]), bv=jnp.stack(bs["wv"]),
        wq=jnp.stack(ws["wq"]), bq=jnp.stack(bs["wq"]),
        wf=jnp.stack(ws["wf"]), bf=jnp.stack(bs["wf"]),
        w1=jnp.stack(ws["w1"]), b1=jnp.stack(bs["w1"]),
        w2=jnp.stack(ws["w2"]), b2=jnp.stack(bs["w2"]),
        gl=jnp.ones((1, D), jnp.float32),
        bl=jnp.zeros((1, D), jnp.float32))


# --------------------------- pure-JAX reference ------------------------------
def decoder_reference(params, src, attention_mask):
    B, L, D = src.shape
    H = int(params["nhead"])
    dph = D // H
    scale = float(dph // H) ** (-0.5)
    mask = attention_mask.astype(jnp.float32)
    nlayers = params["wk"].shape[0]
    seqs = src
    for i in range(nlayers):
        qn = _ln(seqs, params["ga"][i], params["ba"][i], 1e-8)
        k = qn @ params["wk"][i] + params["bk"][i]
        v = seqs @ params["wv"][i] + params["bv"][i]
        q = seqs @ params["wq"][i] + params["bq"][i]
        k_h = k.reshape(B * H, -1, dph)
        v_h = v.reshape(B * H, -1, dph)
        q_h = q.reshape(B * H, -1, dph)
        s = jnp.einsum("bld,bmd->blm", q_h, k_h) * scale
        s = jnp.where(mask[None] != 0, -100000000.0, s)
        p = jax.nn.softmax(s, axis=-1)
        ctx = jnp.einsum("blm,bmd->bld", p, v_h).reshape(B, -1, dph * H)
        out = ctx @ params["wf"][i] + params["bf"][i]
        mha = _ln(seqs + out, params["gm"][i], params["bm"][i], 1e-5)
        seqs = qn + mha
        seqs = _ln(seqs, params["gf"][i], params["bgf"][i], 1e-8)
        seqs = jnp.maximum(seqs @ params["w1"][i] + params["b1"][i], 0.0) \
            @ params["w2"][i] + params["b2"][i]
    return _ln(seqs, params["gl"], params["bl"], 1e-8)


if __name__ == "__main__":
    B, L, ninp, nhead, nlayers = 2, 8, 32, 4, 2
    key = jax.random.PRNGKey(0)
    kp, kx = jax.random.split(key)
    params = init_params(kp, ninp, nhead, nlayers)
    src = jax.random.normal(kx, (B, L, ninp), jnp.float32)
    # causal mask: nonzero above the diagonal => position masked out
    attention_mask = jnp.triu(jnp.ones((L, L), jnp.float32), k=1)

    out = decoder_forward(params, src, attention_mask)
    out = jax.block_until_ready(out)

    ref = decoder_reference(params, src, attention_mask)
    assert out.shape == (B, L, ninp)
    assert bool(jnp.all(jnp.isfinite(out)))
    np.testing.assert_allclose(np.asarray(out), np.asarray(ref), atol=2e-2, rtol=2e-2)
    print("KERNEL_OK")
</pallas_src>

<mosaic_0001>
module attributes {stable_mosaic.version = 11 : i64} {
  func.func @decoder_kernel(%arg0: i32, %arg1: i32, %arg2: memref<1x8x32xf32, #tpu.memory_space<vmem>>, %arg3: memref<32x32xf32, #tpu.memory_space<vmem>>, %arg4: memref<4x32x8xf32, #tpu.memory_space<vmem>>, %arg5: memref<4x8x32xf32, #tpu.memory_space<vmem>>, %arg6: memref<1x1x32xf32, #tpu.memory_space<vmem>>, %arg7: memref<1x1x32xf32, #tpu.memory_space<vmem>>, %arg8: memref<1x32x32xf32, #tpu.memory_space<vmem>>, %arg9: memref<1x1x32xf32, #tpu.memory_space<vmem>>, %arg10: memref<1x32x32xf32, #tpu.memory_space<vmem>>, %arg11: memref<1x1x32xf32, #tpu.memory_space<vmem>>, %arg12: memref<1x32x32xf32, #tpu.memory_space<vmem>>, %arg13: memref<1x1x32xf32, #tpu.memory_space<vmem>>, %arg14: memref<1x32x32xf32, #tpu.memory_space<vmem>>, %arg15: memref<1x1x32xf32, #tpu.memory_space<vmem>>, %arg16: memref<1x1x32xf32, #tpu.memory_space<vmem>>, %arg17: memref<1x1x32xf32, #tpu.memory_space<vmem>>, %arg18: memref<1x1x32xf32, #tpu.memory_space<vmem>>, %arg19: memref<1x1x32xf32, #tpu.memory_space<vmem>>, %arg20: memref<1x32x128xf32, #tpu.memory_space<vmem>>, %arg21: memref<1x1x128xf32, #tpu.memory_space<vmem>>, %arg22: memref<1x128x32xf32, #tpu.memory_space<vmem>>, %arg23: memref<1x1x32xf32, #tpu.memory_space<vmem>>, %arg24: memref<1x32xf32, #tpu.memory_space<vmem>>, %arg25: memref<1x32xf32, #tpu.memory_space<vmem>>, %arg26: memref<1x8x32xf32, #tpu.memory_space<vmem>>, %arg27: memref<8x32xf32, #tpu.memory_space<vmem>>) attributes {dimension_semantics = [#tpu.dimension_semantics<parallel>, #tpu.dimension_semantics<arbitrary>], iteration_bounds = array<i64: 2, 2>, scalar_prefetch = 0 : i64, scratch_operands = 1 : i64, tpu.core_type = #tpu.core_type<tc>, window_params = [{transform_indices = @transform_0, window_bounds = array<i64: 1, 8, 32>}, {pipeline_mode = #tpu.pipeline_mode<synchronous>, transform_indices = @transform_1, window_bounds = array<i64: 32, 32>}, {pipeline_mode = #tpu.pipeline_mode<synchronous>, transform_indices = @transform_2, window_bounds = array<i64: 4, 32, 8>}, {pipeline_mode = #tpu.pipeline_mode<synchronous>, transform_indices = @transform_3, window_bounds = array<i64: 4, 8, 32>}, {transform_indices = @transform_4, window_bounds = array<i64: 1, 1, 32>}, {transform_indices = @transform_5, window_bounds = array<i64: 1, 1, 32>}, {transform_indices = @transform_6, window_bounds = array<i64: 1, 32, 32>}, {transform_indices = @transform_7, window_bounds = array<i64: 1, 1, 32>}, {transform_indices = @transform_8, window_bounds = array<i64: 1, 32, 32>}, {transform_indices = @transform_9, window_bounds = array<i64: 1, 1, 32>}, {transform_indices = @transform_10, window_bounds = array<i64: 1, 32, 32>}, {transform_indices = @transform_11, window_bounds = array<i64: 1, 1, 32>}, {transform_indices = @transform_12, window_bounds = array<i64: 1, 32, 32>}, {transform_indices = @transform_13, window_bounds = array<i64: 1, 1, 32>}, {transform_indices = @transform_14, window_bounds = array<i64: 1, 1, 32>}, {transform_indices = @transform_15, window_bounds = array<i64: 1, 1, 32>}, {transform_indices = @transform_16, window_bounds = array<i64: 1, 1, 32>}, {transform_indices = @transform_17, window_bounds = array<i64: 1, 1, 32>}, {transform_indices = @transform_18, window_bounds = array<i64: 1, 32, 128>}, {transform_indices = @transform_19, window_bounds = array<i64: 1, 1, 128>}, {transform_indices = @transform_20, window_bounds = array<i64: 1, 128, 32>}, {transform_indices = @transform_21, window_bounds = array<i64: 1, 1, 32>}, {pipeline_mode = #tpu.pipeline_mode<synchronous>, transform_indices = @transform_22, window_bounds = array<i64: 1, 32>}, {pipeline_mode = #tpu.pipeline_mode<synchronous>, transform_indices = @transform_23, window_bounds = array<i64: 1, 32>}, {transform_indices = @transform_24, window_bounds = array<i64: 1, 8, 32>}]} {
    %c0_i32 = arith.constant 0 : i32
    %0 = arith.cmpi eq, %arg1, %c0_i32 : i32
    %1 = arith.extui %0 : i1 to i32
    %c0_i32_0 = arith.constant 0 : i32
    %2 = arith.cmpi ne, %1, %c0_i32_0 : i32
    scf.if %2 {
      %c0_153 = arith.constant 0 : index
      %c0_154 = arith.constant 0 : index
      %c0_155 = arith.constant 0 : index
      %230 = vector.load %arg2[%c0_153, %c0_154, %c0_155] : memref<1x8x32xf32, #tpu.memory_space<vmem>>, vector<1x8x32xf32>
      %231 = vector.shape_cast %230 : vector<1x8x32xf32> to vector<8x32xf32>
      %c0_156 = arith.constant 0 : index
      %c0_157 = arith.constant 0 : index
      %232 = vector.load %arg27[%c0_156, %c0_157] : memref<8x32xf32, #tpu.memory_space<vmem>>, vector<8x32xf32>
      tpu.vector_store %arg27[%c0_156, %c0_157], %231 {strides = array<i32>} : memref<8x32xf32, #tpu.memory_space<vmem>>, vector<8x32xf32>,
    } else {
    }
    %c0 = arith.constant 0 : index
    %c0_1 = arith.constant 0 : index
    %3 = vector.load %arg27[%c0, %c0_1] : memref<8x32xf32, #tpu.memory_space<vmem>>, vector<8x32xf32>
    %c0_2 = arith.constant 0 : index
    %c0_3 = arith.constant 0 : index
    %c0_4 = arith.constant 0 : index
    %4 = vector.load %arg6[%c0_2, %c0_3, %c0_4] : memref<1x1x32xf32, #tpu.memory_space<vmem>>, vector<1x1x32xf32>
    %5 = vector.shape_cast %4 : vector<1x1x32xf32> to vector<1x32xf32>
    %c0_5 = arith.constant 0 : index
    %c0_6 = arith.constant 0 : index
    %c0_7 = arith.constant 0 : index
    %6 = vector.load %arg7[%c0_5, %c0_6, %c0_7] : memref<1x1x32xf32, #tpu.memory_space<vmem>>, vector<1x1x32xf32>
    %7 = vector.shape_cast %6 : vector<1x1x32xf32> to vector<1x32xf32>
    %cst = arith.constant dense<0.000000e+00> : vector<8xf32>
    %8 = vector.multi_reduction <add>, %3, %cst [1] : vector<8x32xf32> to vector<8xf32>
    %9 = vector.shape_cast %8 : vector<8xf32> to vector<8x1xf32>
    %cst_8 = arith.constant 3.200000e+01 : f32
    %10 = vector.broadcast %cst_8 : f32 to vector<8x1xf32>
    %11 = arith.divf %9, %10 : vector<8x1xf32>
    %12 = vector.broadcast %11 : vector<8x1xf32> to vector<8x32xf32>
    %13 = arith.subf %3, %12 : vector<8x32xf32>
    %14 = arith.mulf %13, %13 : vector<8x32xf32>
    %cst_9 = arith.constant dense<0.000000e+00> : vector<8xf32>
    %15 = vector.multi_reduction <add>, %14, %cst_9 [1] : vector<8x32xf32> to vector<8xf32>
    %16 = vector.shape_cast %15 : vector<8xf32> to vector<8x1xf32>
    %cst_10 = arith.constant 3.200000e+01 : f32
    %17 = vector.broadcast %cst_10 : f32 to vector<8x1xf32>
    %18 = arith.divf %16, %17 : vector<8x1xf32>
    %19 = vector.broadcast %11 : vector<8x1xf32> to vector<8x32xf32>
    %20 = arith.subf %3, %19 : vector<8x32xf32>
    %cst_11 = arith.constant 9.99999993E-9 : f32
    %21 = vector.broadcast %cst_11 : f32 to vector<8x1xf32>
    %22 = arith.addf %18, %21 : vector<8x1xf32>
    %23 = math.rsqrt %22 : vector<8x1xf32>
    %24 = vector.broadcast %23 : vector<8x1xf32> to vector<8x32xf32>
    %25 = arith.mulf %20, %24 : vector<8x32xf32>
    %26 = vector.broadcast %5 : vector<1x32xf32> to vector<8x32xf32>
    %27 = arith.mulf %25, %26 : vector<8x32xf32>
    %28 = vector.broadcast %7 : vector<1x32xf32> to vector<8x32xf32>
    %29 = arith.addf %27, %28 : vector<8x32xf32>
    %c0_12 = arith.constant 0 : index
    %c0_13 = arith.constant 0 : index
    %c0_14 = arith.constant 0 : index
    %30 = vector.load %arg8[%c0_12, %c0_13, %c0_14] : memref<1x32x32xf32, #tpu.memory_space<vmem>>, vector<1x32x32xf32>
    %31 = vector.shape_cast %30 : vector<1x32x32xf32> to vector<32x32xf32>
    %cst_15 = arith.constant dense<0.000000e+00> : vector<8x32xf32>
    %32 = tpu.matmul %29, %31, %cst_15 {dimension_numbers = #tpu.dot_dimension_numbers<[1], [0], [0], [1], [0, 0, 1, 1], [], []>} : vector<8x32xf32>, vector<32x32xf32>, vector<8x32xf32> -> vector<8x32xf32>
    %c0_16 = arith.constant 0 : index
    %c0_17 = arith.constant 0 : index
    %c0_18 = arith.constant 0 : index
    %33 = vector.load %arg9[%c0_16, %c0_17, %c0_18] : memref<1x1x32xf32, #tpu.memory_space<vmem>>, vector<1x1x32xf32>
    %34 = vector.shape_cast %33 : vector<1x1x32xf32> to vector<1x32xf32>
    %35 = vector.broadcast %34 : vector<1x32xf32> to vector<8x32xf32>
    %36 = arith.addf %32, %35 : vector<8x32xf32>
    %c0_19 = arith.constant 0 : index
    %c0_20 = arith.constant 0 : index
    %c0_21 = arith.constant 0 : index
    %37 = vector.load %arg10[%c0_19, %c0_20, %c0_21] : memref<1x32x32xf32, #tpu.memory_space<vmem>>, vector<1x32x32xf32>
    %38 = vector.shape_cast %37 : vector<1x32x32xf32> to vector<32x32xf32>
    %cst_22 = arith.constant dense<0.000000e+00> : vector<8x32xf32>
    %39 = tpu.matmul %3, %38, %cst_22 {dimension_numbers = #tpu.dot_dimension_numbers<[1], [0], [0], [1], [0, 0, 1, 1], [], []>} : vector<8x32xf32>, vector<32x32xf32>, vector<8x32xf32> -> vector<8x32xf32>
    %c0_23 = arith.constant 0 : index
    %c0_24 = arith.constant 0 : index
    %c0_25 = arith.constant 0 : index
    %40 = vector.load %arg11[%c0_23, %c0_24, %c0_25] : memref<1x1x32xf32, #tpu.memory_space<vmem>>, vector<1x1x32xf32>
    %41 = vector.shape_cast %40 : vector<1x1x32xf32> to vector<1x32xf32>
    %42 = vector.broadcast %41 : vector<1x32xf32> to vector<8x32xf32>
    %43 = arith.addf %39, %42 : vector<8x32xf32>
    %c0_26 = arith.constant 0 : index
    %c0_27 = arith.constant 0 : index
    %c0_28 = arith.constant 0 : index
    %44 = vector.load %arg12[%c0_26, %c0_27, %c0_28] : memref<1x32x32xf32, #tpu.memory_space<vmem>>, vector<1x32x32xf32>
    %45 = vector.shape_cast %44 : vector<1x32x32xf32> to vector<32x32xf32>
    %cst_29 = arith.constant dense<0.000000e+00> : vector<8x32xf32>
    %46 = tpu.matmul %3, %45, %cst_29 {dimension_numbers = #tpu.dot_dimension_numbers<[1], [0], [0], [1], [0, 0, 1, 1], [], []>} : vector<8x32xf32>, vector<32x32xf32>, vector<8x32xf32> -> vector<8x32xf32>
    %c0_30 = arith.constant 0 : index
    %c0_31 = arith.constant 0 : index
    %c0_32 = arith.constant 0 : index
    %47 = vector.load %arg13[%c0_30, %c0_31, %c0_32] : memref<1x1x32xf32, #tpu.memory_space<vmem>>, vector<1x1x32xf32>
    %48 = vector.shape_cast %47 : vector<1x1x32xf32> to vector<1x32xf32>
    %49 = vector.broadcast %48 : vector<1x32xf32> to vector<8x32xf32>
    %50 = arith.addf %46, %49 : vector<8x32xf32>
    %c0_33 = arith.constant 0 : index
    %c0_34 = arith.constant 0 : index
    %c0_35 = arith.constant 0 : index
    %51 = vector.load %arg4[%c0_33, %c0_34, %c0_35] : memref<4x32x8xf32, #tpu.memory_space<vmem>>, vector<1x32x8xf32>
    %52 = vector.shape_cast %51 : vector<1x32x8xf32> to vector<32x8xf32>
    %53 = vector.extract_strided_slice %50 {offsets = [0, 0], sizes = [8, 8], strides = [1, 1]} : vector<8x32xf32> to vector<8x8xf32>
    %cst_36 = arith.constant dense<0.000000e+00> : vector<32x8xf32>
    %54 = tpu.matmul %52, %53, %cst_36 {dimension_numbers = #tpu.dot_dimension_numbers<[1], [0], [0], [1], [0, 0, 1, 1], [], []>} : vector<32x8xf32>, vector<8x8xf32>, vector<32x8xf32> -> vector<32x8xf32>
    %c1 = arith.constant 1 : index
    %c0_37 = arith.constant 0 : index
    %c0_38 = arith.constant 0 : index
    %55 = vector.load %arg4[%c1, %c0_37, %c0_38] : memref<4x32x8xf32, #tpu.memory_space<vmem>>, vector<1x32x8xf32>
    %56 = vector.shape_cast %55 : vector<1x32x8xf32> to vector<32x8xf32>
    %57 = vector.extract_strided_slice %50 {offsets = [0, 8], sizes = [8, 8], strides = [1, 1]} : vector<8x32xf32> to vector<8x8xf32>
    %cst_39 = arith.constant dense<0.000000e+00> : vector<32x8xf32>
    %58 = tpu.matmul %56, %57, %cst_39 {dimension_numbers = #tpu.dot_dimension_numbers<[1], [0], [0], [1], [0, 0, 1, 1], [], []>} : vector<32x8xf32>, vector<8x8xf32>, vector<32x8xf32> -> vector<32x8xf32>
    %59 = arith.addf %54, %58 : vector<32x8xf32>
    %c2 = arith.constant 2 : index
    %c0_40 = arith.constant 0 : index
    %c0_41 = arith.constant 0 : index
    %60 = vector.load %arg4[%c2, %c0_40, %c0_41] : memref<4x32x8xf32, #tpu.memory_space<vmem>>, vector<1x32x8xf32>
    %61 = vector.shape_cast %60 : vector<1x32x8xf32> to vector<32x8xf32>
    %62 = vector.extract_strided_slice %50 {offsets = [0, 16], sizes = [8, 8], strides = [1, 1]} : vector<8x32xf32> to vector<8x8xf32>
    %cst_42 = arith.constant dense<0.000000e+00> : vector<32x8xf32>
    %63 = tpu.matmul %61, %62, %cst_42 {dimension_numbers = #tpu.dot_dimension_numbers<[1], [0], [0], [1], [0, 0, 1, 1], [], []>} : vector<32x8xf32>, vector<8x8xf32>, vector<32x8xf32> -> vector<32x8xf32>
    %64 = arith.addf %59, %63 : vector<32x8xf32>
    %c3 = arith.constant 3 : index
    %c0_43 = arith.constant 0 : index
    %c0_44 = arith.constant 0 : index
    %65 = vector.load %arg4[%c3, %c0_43, %c0_44] : memref<4x32x8xf32, #tpu.memory_space<vmem>>, vector<1x32x8xf32>
    %66 = vector.shape_cast %65 : vector<1x32x8xf32> to vector<32x8xf32>
    %67 = vector.extract_strided_slice %50 {offsets = [0, 24], sizes = [8, 8], strides = [1, 1]} : vector<8x32xf32> to vector<8x8xf32>
    %cst_45 = arith.constant dense<0.000000e+00> : vector<32x8xf32>
    %68 = tpu.matmul %66, %67, %cst_45 {dimension_numbers = #tpu.dot_dimension_numbers<[1], [0], [0], [1], [0, 0, 1, 1], [], []>} : vector<32x8xf32>, vector<8x8xf32>, vector<32x8xf32> -> vector<32x8xf32>
    %69 = arith.addf %64, %68 : vector<32x8xf32>
    %c0_46 = arith.constant 0 : index
    %c0_47 = arith.constant 0 : index
    %c0_48 = arith.constant 0 : index
    %70 = vector.load %arg4[%c0_46, %c0_47, %c0_48] : memref<4x32x8xf32, #tpu.memory_space<vmem>>, vector<1x32x8xf32>
    %71 = vector.shape_cast %70 : vector<1x32x8xf32> to vector<32x8xf32>
    %72 = vector.extract_strided_slice %36 {offsets = [0, 0], sizes = [8, 8], strides = [1, 1]} : vector<8x32xf32> to vector<8x8xf32>
    %cst_49 = arith.constant dense<0.000000e+00> : vector<32x8xf32>
    %73 = tpu.matmul %71, %72, %cst_49 {dimension_numbers = #tpu.dot_dimension_numbers<[1], [0], [0], [1], [0, 0, 1, 1], [], []>} : vector<32x8xf32>, vector<8x8xf32>, vector<32x8xf32> -> vector<32x8xf32>
    %c1_50 = arith.constant 1 : index
    %c0_51 = arith.constant 0 : index
    %c0_52 = arith.constant 0 : index
    %74 = vector.load %arg4[%c1_50, %c0_51, %c0_52] : memref<4x32x8xf32, #tpu.memory_space<vmem>>, vector<1x32x8xf32>
    %75 = vector.shape_cast %74 : vector<1x32x8xf32> to vector<32x8xf32>
    %76 = vector.extract_strided_slice %36 {offsets = [0, 8], sizes = [8, 8], strides = [1, 1]} : vector<8x32xf32> to vector<8x8xf32>
    %cst_53 = arith.constant dense<0.000000e+00> : vector<32x8xf32>
    %77 = tpu.matmul %75, %76, %cst_53 {dimension_numbers = #tpu.dot_dimension_numbers<[1], [0], [0], [1], [0, 0, 1, 1], [], []>} : vector<32x8xf32>, vector<8x8xf32>, vector<32x8xf32> -> vector<32x8xf32>
    %78 = arith.addf %73, %77 : vector<32x8xf32>
    %c2_54 = arith.constant 2 : index
    %c0_55 = arith.constant 0 : index
    %c0_56 = arith.constant 0 : index
    %79 = vector.load %arg4[%c2_54, %c0_55, %c0_56] : memref<4x32x8xf32, #tpu.memory_space<vmem>>, vector<1x32x8xf32>
    %80 = vector.shape_cast %79 : vector<1x32x8xf32> to vector<32x8xf32>
    %81 = vector.extract_strided_slice %36 {offsets = [0, 16], sizes = [8, 8], strides = [1, 1]} : vector<8x32xf32> to vector<8x8xf32>
    %cst_57 = arith.constant dense<0.000000e+00> : vector<32x8xf32>
    %82 = tpu.matmul %80, %81, %cst_57 {dimension_numbers = #tpu.dot_dimension_numbers<[1], [0], [0], [1], [0, 0, 1, 1], [], []>} : vector<32x8xf32>, vector<8x8xf32>, vector<32x8xf32> -> vector<32x8xf32>
    %83 = arith.addf %78, %82 : vector<32x8xf32>
    %c3_58 = arith.constant 3 : index
    %c0_59 = arith.constant 0 : index
    %c0_60 = arith.constant 0 : index
    %84 = vector.load %arg4[%c3_58, %c0_59, %c0_60] : memref<4x32x8xf32, #tpu.memory_space<vmem>>, vector<1x32x8xf32>
    %85 = vector.shape_cast %84 : vector<1x32x8xf32> to vector<32x8xf32>
    %86 = vector.extract_strided_slice %36 {offsets = [0, 24], sizes = [8, 8], strides = [1, 1]} : vector<8x32xf32> to vector<8x8xf32>
    %cst_61 = arith.constant dense<0.000000e+00> : vector<32x8xf32>
    %87 = tpu.matmul %85, %86, %cst_61 {dimension_numbers = #tpu.dot_dimension_numbers<[1], [0], [0], [1], [0, 0, 1, 1], [], []>} : vector<32x8xf32>, vector<8x8xf32>, vector<32x8xf32> -> vector<32x8xf32>
    %88 = arith.addf %83, %87 : vector<32x8xf32>
    %c0_62 = arith.constant 0 : index
    %c0_63 = arith.constant 0 : index
    %c0_64 = arith.constant 0 : index
    %89 = vector.load %arg4[%c0_62, %c0_63, %c0_64] : memref<4x32x8xf32, #tpu.memory_space<vmem>>, vector<1x32x8xf32>
    %90 = vector.shape_cast %89 : vector<1x32x8xf32> to vector<32x8xf32>
    %91 = vector.extract_strided_slice %43 {offsets = [0, 0], sizes = [8, 8], strides = [1, 1]} : vector<8x32xf32> to vector<8x8xf32>
    %cst_65 = arith.constant dense<0.000000e+00> : vector<32x8xf32>
    %92 = tpu.matmul %90, %91, %cst_65 {dimension_numbers = #tpu.dot_dimension_numbers<[1], [0], [0], [1], [0, 0, 1, 1], [], []>} : vector<32x8xf32>, vector<8x8xf32>, vector<32x8xf32> -> vector<32x8xf32>
    %c1_66 = arith.constant 1 : index
    %c0_67 = arith.constant 0 : index
    %c0_68 = arith.constant 0 : index
    %93 = vector.load %arg4[%c1_66, %c0_67, %c0_68] : memref<4x32x8xf32, #tpu.memory_space<vmem>>, vector<1x32x8xf32>
    %94 = vector.shape_cast %93 : vector<1x32x8xf32> to vector<32x8xf32>
    %95 = vector.extract_strided_slice %43 {offsets = [0, 8], sizes = [8, 8], strides = [1, 1]} : vector<8x32xf32> to vector<8x8xf32>
    %cst_69 = arith.constant dense<0.000000e+00> : vector<32x8xf32>
    %96 = tpu.matmul %94, %95, %cst_69 {dimension_numbers = #tpu.dot_dimension_numbers<[1], [0], [0], [1], [0, 0, 1, 1], [], []>} : vector<32x8xf32>, vector<8x8xf32>, vector<32x8xf32> -> vector<32x8xf32>
    %97 = arith.addf %92, %96 : vector<32x8xf32>
    %c2_70 = arith.constant 2 : index
    %c0_71 = arith.constant 0 : index
    %c0_72 = arith.constant 0 : index
    %98 = vector.load %arg4[%c2_70, %c0_71, %c0_72] : memref<4x32x8xf32, #tpu.memory_space<vmem>>, vector<1x32x8xf32>
    %99 = vector.shape_cast %98 : vector<1x32x8xf32> to vector<32x8xf32>
    %100 = vector.extract_strided_slice %43 {offsets = [0, 16], sizes = [8, 8], strides = [1, 1]} : vector<8x32xf32> to vector<8x8xf32>
    %cst_73 = arith.constant dense<0.000000e+00> : vector<32x8xf32>
    %101 = tpu.matmul %99, %100, %cst_73 {dimension_numbers = #tpu.dot_dimension_numbers<[1], [0], [0], [1], [0, 0, 1, 1], [], []>} : vector<32x8xf32>, vector<8x8xf32>, vector<32x8xf32> -> vector<32x8xf32>
    %102 = arith.addf %97, %101 : vector<32x8xf32>
    %c3_74 = arith.constant 3 : index
    %c0_75 = arith.constant 0 : index
    %c0_76 = arith.constant 0 : index
    %103 = vector.load %arg4[%c3_74, %c0_75, %c0_76] : memref<4x32x8xf32, #tpu.memory_space<vmem>>, vector<1x32x8xf32>
    %104 = vector.shape_cast %103 : vector<1x32x8xf32> to vector<32x8xf32>
    %105 = vector.extract_strided_slice %43 {offsets = [0, 24], sizes = [8, 8], strides = [1, 1]} : vector<8x32xf32> to vector<8x8xf32>
    %cst_77 = arith.constant dense<0.000000e+00> : vector<32x8xf32>
    %106 = tpu.matmul %104, %105, %cst_77 {dimension_numbers = #tpu.dot_dimension_numbers<[1], [0], [0], [1], [0, 0, 1, 1], [], []>} : vector<32x8xf32>, vector<8x8xf32>, vector<32x8xf32> -> vector<32x8xf32>
    %107 = arith.addf %102, %106 : vector<32x8xf32>
    %cst_78 = arith.constant dense<0.000000e+00> : vector<32x32xf32>
    %108 = tpu.matmul %69, %88, %cst_78 {dimension_numbers = #tpu.dot_dimension_numbers<[1], [1], [0], [0], [0, 0, 1, 0], [], []>} : vector<32x8xf32>, vector<32x8xf32>, vector<32x32xf32> -> vector<32x32xf32>
    %cst_79 = arith.constant 0.707106769 : f32
    %109 = vector.broadcast %cst_79 : f32 to vector<32x32xf32>
    %110 = arith.mulf %108, %109 : vector<32x32xf32>
    %c0_80 = arith.constant 0 : index
    %c0_81 = arith.constant 0 : index
    %111 = vector.load %arg3[%c0_80, %c0_81] : memref<32x32xf32, #tpu.memory_space<vmem>>, vector<32x32xf32>
    %cst_82 = arith.constant 0.000000e+00 : f32
    %112 = vector.broadcast %cst_82 : f32 to vector<32x32xf32>
    %113 = arith.cmpf one, %111, %112 : vector<32x32xf32>
    %cst_83 = arith.constant -1.000000e+08 : f32
    %114 = vector.broadcast %cst_83 : f32 to vector<32x32xf32>
    %115 = arith.select %113, %114, %110 : vector<32x32xi1>, vector<32x32xf32>
    %cst_84 = arith.constant dense<0xFF800000> : vector<32xf32>
    %116 = vector.multi_reduction <maximumf>, %115, %cst_84 [1] : vector<32x32xf32> to vector<32xf32>
    %117 = vector.shape_cast %116 : vector<32xf32> to vector<32x1xf32>
    %118 = vector.broadcast %117 : vector<32x1xf32> to vector<32x32xf32>
    %119 = arith.subf %115, %118 : vector<32x32xf32>
    %120 = math.exp %119 : vector<32x32xf32>
    %cst_85 = arith.constant dense<0.000000e+00> : vector<32xf32>
    %121 = vector.multi_reduction <add>, %120, %cst_85 [1] : vector<32x32xf32> to vector<32xf32>
    %122 = vector.shape_cast %121 : vector<32xf32> to vector<32x1xf32>
    %123 = tpu.reciprocal %122 {approx = true} : vector<32x1xf32> -> vector<32x1xf32>
    %124 = vector.broadcast %123 : vector<32x1xf32> to vector<32x32xf32>
    %125 = arith.mulf %120, %124 : vector<32x32xf32>
    %cst_86 = arith.constant dense<0.000000e+00> : vector<32x8xf32>
    %126 = tpu.matmul %125, %107, %cst_86 {dimension_numbers = #tpu.dot_dimension_numbers<[1], [0], [0], [1], [0, 0, 1, 1], [], []>} : vector<32x32xf32>, vector<32x8xf32>, vector<32x8xf32> -> vector<32x8xf32>
    %c0_87 = arith.constant 0 : index
    %c0_88 = arith.constant 0 : index
    %c0_89 = arith.constant 0 : index
    %127 = vector.load %arg14[%c0_87, %c0_88, %c0_89] : memref<1x32x32xf32, #tpu.memory_space<vmem>>, vector<1x32x32xf32>
    %128 = vector.shape_cast %127 : vector<1x32x32xf32> to vector<32x32xf32>
    %c0_90 = arith.constant 0 : index
    %c0_91 = arith.constant 0 : index
    %c0_92 = arith.constant 0 : index
    %129 = vector.load %arg15[%c0_90, %c0_91, %c0_92] : memref<1x1x32xf32, #tpu.memory_space<vmem>>, vector<1x1x32xf32>
    %130 = vector.shape_cast %129 : vector<1x1x32xf32> to vector<1x32xf32>
    %c0_93 = arith.constant 0 : index
    %c0_94 = arith.constant 0 : index
    %c0_95 = arith.constant 0 : index
    %131 = vector.load %arg5[%c0_93, %c0_94, %c0_95] : memref<4x8x32xf32, #tpu.memory_space<vmem>>, vector<1x8x32xf32>
    %132 = vector.shape_cast %131 : vector<1x8x32xf32> to vector<8x32xf32>
    %cst_96 = arith.constant dense<0.000000e+00> : vector<8x8xf32>
    %133 = tpu.matmul %132, %126, %cst_96 {dimension_numbers = #tpu.dot_dimension_numbers<[1], [0], [0], [1], [0, 0, 1, 1], [], []>} : vector<8x32xf32>, vector<32x8xf32>, vector<8x8xf32> -> vector<8x8xf32>
    %134 = vector.extract_strided_slice %128 {offsets = [0, 0], sizes = [8, 32], strides = [1, 1]} : vector<32x32xf32> to vector<8x32xf32>
    %cst_97 = arith.constant dense<0.000000e+00> : vector<8x32xf32>
    %135 = tpu.matmul %133, %134, %cst_97 {dimension_numbers = #tpu.dot_dimension_numbers<[1], [0], [0], [1], [0, 0, 1, 1], [], []>} : vector<8x8xf32>, vector<8x32xf32>, vector<8x32xf32> -> vector<8x32xf32>
    %136 = vector.broadcast %130 : vector<1x32xf32> to vector<8x32xf32>
    %137 = arith.addf %136, %135 : vector<8x32xf32>
    %c1_98 = arith.constant 1 : index
    %c0_99 = arith.constant 0 : index
    %c0_100 = arith.constant 0 : index
    %138 = vector.load %arg5[%c1_98, %c0_99, %c0_100] : memref<4x8x32xf32, #tpu.memory_space<vmem>>, vector<1x8x32xf32>
    %139 = vector.shape_cast %138 : vector<1x8x32xf32> to vector<8x32xf32>
    %cst_101 = arith.constant dense<0.000000e+00> : vector<8x8xf32>
    %140 = tpu.matmul %139, %126, %cst_101 {dimension_numbers = #tpu.dot_dimension_numbers<[1], [0], [0], [1], [0, 0, 1, 1], [], []>} : vector<8x32xf32>, vector<32x8xf32>, vector<8x8xf32> -> vector<8x8xf32>
    %141 = vector.extract_strided_slice %128 {offsets = [8, 0], sizes = [8, 32], strides = [1, 1]} : vector<32x32xf32> to vector<8x32xf32>
    %cst_102 = arith.constant dense<0.000000e+00> : vector<8x32xf32>
    %142 = tpu.matmul %140, %141, %cst_102 {dimension_numbers = #tpu.dot_dimension_numbers<[1], [0], [0], [1], [0, 0, 1, 1], [], []>} : vector<8x8xf32>, vector<8x32xf32>, vector<8x32xf32> -> vector<8x32xf32>
    %143 = arith.addf %137, %142 : vector<8x32xf32>
    %c2_103 = arith.constant 2 : index
    %c0_104 = arith.constant 0 : index
    %c0_105 = arith.constant 0 : index
    %144 = vector.load %arg5[%c2_103, %c0_104, %c0_105] : memref<4x8x32xf32, #tpu.memory_space<vmem>>, vector<1x8x32xf32>
    %145 = vector.shape_cast %144 : vector<1x8x32xf32> to vector<8x32xf32>
    %cst_106 = arith.constant dense<0.000000e+00> : vector<8x8xf32>
    %146 = tpu.matmul %145, %126, %cst_106 {dimension_numbers = #tpu.dot_dimension_numbers<[1], [0], [0], [1], [0, 0, 1, 1], [], []>} : vector<8x32xf32>, vector<32x8xf32>, vector<8x8xf32> -> vector<8x8xf32>
    %147 = vector.extract_strided_slice %128 {offsets = [16, 0], sizes = [8, 32], strides = [1, 1]} : vector<32x32xf32> to vector<8x32xf32>
    %cst_107 = arith.constant dense<0.000000e+00> : vector<8x32xf32>
    %148 = tpu.matmul %146, %147, %cst_107 {dimension_numbers = #tpu.dot_dimension_numbers<[1], [0], [0], [1], [0, 0, 1, 1], [], []>} : vector<8x8xf32>, vector<8x32xf32>, vector<8x32xf32> -> vector<8x32xf32>
    %149 = arith.addf %143, %148 : vector<8x32xf32>
    %c3_108 = arith.constant 3 : index
    %c0_109 = arith.constant 0 : index
    %c0_110 = arith.constant 0 : index
    %150 = vector.load %arg5[%c3_108, %c0_109, %c0_110] : memref<4x8x32xf32, #tpu.memory_space<vmem>>, vector<1x8x32xf32>
    %151 = vector.shape_cast %150 : vector<1x8x32xf32> to vector<8x32xf32>
    %cst_111 = arith.constant dense<0.000000e+00> : vector<8x8xf32>
    %152 = tpu.matmul %151, %126, %cst_111 {dimension_numbers = #tpu.dot_dimension_numbers<[1], [0], [0], [1], [0, 0, 1, 1], [], []>} : vector<8x32xf32>, vector<32x8xf32>, vector<8x8xf32> -> vector<8x8xf32>
    %153 = vector.extract_strided_slice %128 {offsets = [24, 0], sizes = [8, 32], strides = [1, 1]} : vector<32x32xf32> to vector<8x32xf32>
    %cst_112 = arith.constant dense<0.000000e+00> : vector<8x32xf32>
    %154 = tpu.matmul %152, %153, %cst_112 {dimension_numbers = #tpu.dot_dimension_numbers<[1], [0], [0], [1], [0, 0, 1, 1], [], []>} : vector<8x8xf32>, vector<8x32xf32>, vector<8x32xf32> -> vector<8x32xf32>
    %155 = arith.addf %149, %154 : vector<8x32xf32>
    %156 = arith.addf %3, %155 : vector<8x32xf32>
    %c0_113 = arith.constant 0 : index
    %c0_114 = arith.constant 0 : index
    %c0_115 = arith.constant 0 : index
    %157 = vector.load %arg16[%c0_113, %c0_114, %c0_115] : memref<1x1x32xf32, #tpu.memory_space<vmem>>, vector<1x1x32xf32>
    %158 = vector.shape_cast %157 : vector<1x1x32xf32> to vector<1x32xf32>
    %c0_116 = arith.constant 0 : index
    %c0_117 = arith.constant 0 : index
    %c0_118 = arith.constant 0 : index
    %159 = vector.load %arg17[%c0_116, %c0_117, %c0_118] : memref<1x1x32xf32, #tpu.memory_space<vmem>>, vector<1x1x32xf32>
    %160 = vector.shape_cast %159 : vector<1x1x32xf32> to vector<1x32xf32>
    %cst_119 = arith.constant dense<0.000000e+00> : vector<8xf32>
    %161 = vector.multi_reduction <add>, %156, %cst_119 [1] : vector<8x32xf32> to vector<8xf32>
    %162 = vector.shape_cast %161 : vector<8xf32> to vector<8x1xf32>
    %cst_120 = arith.constant 3.200000e+01 : f32
    %163 = vector.broadcast %cst_120 : f32 to vector<8x1xf32>
    %164 = arith.divf %162, %163 : vector<8x1xf32>
    %165 = vector.broadcast %164 : vector<8x1xf32> to vector<8x32xf32>
    %166 = arith.subf %156, %165 : vector<8x32xf32>
    %167 = arith.mulf %166, %166 : vector<8x32xf32>
    %cst_121 = arith.constant dense<0.000000e+00> : vector<8xf32>
    %168 = vector.multi_reduction <add>, %167, %cst_121 [1] : vector<8x32xf32> to vector<8xf32>
    %169 = vector.shape_cast %168 : vector<8xf32> to vector<8x1xf32>
    %cst_122 = arith.constant 3.200000e+01 : f32
    %170 = vector.broadcast %cst_122 : f32 to vector<8x1xf32>
    %171 = arith.divf %169, %170 : vector<8x1xf32>
    %172 = vector.broadcast %164 : vector<8x1xf32> to vector<8x32xf32>
    %173 = arith.subf %156, %172 : vector<8x32xf32>
    %cst_123 = arith.constant 9.99999974E-6 : f32
    %174 = vector.broadcast %cst_123 : f32 to vector<8x1xf32>
    %175 = arith.addf %171, %174 : vector<8x1xf32>
    %176 = math.rsqrt %175 : vector<8x1xf32>
    %177 = vector.broadcast %176 : vector<8x1xf32> to vector<8x32xf32>
    %178 = arith.mulf %173, %177 : vector<8x32xf32>
    %179 = vector.broadcast %158 : vector<1x32xf32> to vector<8x32xf32>
    %180 = arith.mulf %178, %179 : vector<8x32xf32>
    %181 = vector.broadcast %160 : vector<1x32xf32> to vector<8x32xf32>
    %182 = arith.addf %180, %181 : vector<8x32xf32>
    %183 = arith.addf %29, %182 : vector<8x32xf32>
    %c0_124 = arith.constant 0 : index
    %c0_125 = arith.constant 0 : index
    %c0_126 = arith.constant 0 : index
    %184 = vector.load %arg18[%c0_124, %c0_125, %c0_126] : memref<1x1x32xf32, #tpu.memory_space<vmem>>, vector<1x1x32xf32>
    %185 = vector.shape_cast %184 : vector<1x1x32xf32> to vector<1x32xf32>
    %c0_127 = arith.constant 0 : index
    %c0_128 = arith.constant 0 : index
    %c0_129 = arith.constant 0 : index
    %186 = vector.load %arg19[%c0_127, %c0_128, %c0_129] : memref<1x1x32xf32, #tpu.memory_space<vmem>>, vector<1x1x32xf32>
    %187 = vector.shape_cast %186 : vector<1x1x32xf32> to vector<1x32xf32>
    %cst_130 = arith.constant dense<0.000000e+00> : vector<8xf32>
    %188 = vector.multi_reduction <add>, %183, %cst_130 [1] : vector<8x32xf32> to vector<8xf32>
    %189 = vector.shape_cast %188 : vector<8xf32> to vector<8x1xf32>
    %cst_131 = arith.constant 3.200000e+01 : f32
    %190 = vector.broadcast %cst_131 : f32 to vector<8x1xf32>
    %191 = arith.divf %189, %190 : vector<8x1xf32>
    %192 = vector.broadcast %191 : vector<8x1xf32> to vector<8x32xf32>
    %193 = arith.subf %183, %192 : vector<8x32xf32>
    %194 = arith.mulf %193, %193 : vector<8x32xf32>
    %cst_132 = arith.constant dense<0.000000e+00> : vector<8xf32>
    %195 = vector.multi_reduction <add>, %194, %cst_132 [1] : vector<8x32xf32> to vector<8xf32>
    %196 = vector.shape_cast %195 : vector<8xf32> to vector<8x1xf32>
    %cst_133 = arith.constant 3.200000e+01 : f32
    %197 = vector.broadcast %cst_133 : f32 to vector<8x1xf32>
    %198 = arith.divf %196, %197 : vector<8x1xf32>
    %199 = vector.broadcast %191 : vector<8x1xf32> to vector<8x32xf32>
    %200 = arith.subf %183, %199 : vector<8x32xf32>
    %cst_134 = arith.constant 9.99999993E-9 : f32
    %201 = vector.broadcast %cst_134 : f32 to vector<8x1xf32>
    %202 = arith.addf %198, %201 : vector<8x1xf32>
    %203 = math.rsqrt %202 : vector<8x1xf32>
    %204 = vector.broadcast %203 : vector<8x1xf32> to vector<8x32xf32>
    %205 = arith.mulf %200, %204 : vector<8x32xf32>
    %206 = vector.broadcast %185 : vector<1x32xf32> to vector<8x32xf32>
    %207 = arith.mulf %205, %206 : vector<8x32xf32>
    %208 = vector.broadcast %187 : vector<1x32xf32> to vector<8x32xf32>
    %209 = arith.addf %207, %208 : vector<8x32xf32>
    %c0_135 = arith.constant 0 : index
    %c0_136 = arith.constant 0 : index
    %c0_137 = arith.constant 0 : index
    %210 = vector.load %arg20[%c0_135, %c0_136, %c0_137] : memref<1x32x128xf32, #tpu.memory_space<vmem>>, vector<1x32x128xf32>
    %211 = vector.shape_cast %210 : vector<1x32x128xf32> to vector<32x128xf32>
    %cst_138 = arith.constant dense<0.000000e+00> : vector<8x128xf32>
    %212 = tpu.matmul %209, %211, %cst_138 {dimension_numbers = #tpu.dot_dimension_numbers<[1], [0], [0], [1], [0, 0, 1, 1], [], []>} : vector<8x32xf32>, vector<32x128xf32>, vector<8x128xf32> -> vector<8x128xf32>
    %c0_139 = arith.constant 0 : index
    %c0_140 = arith.constant 0 : index
    %c0_141 = arith.constant 0 : index
    %213 = vector.load %arg21[%c0_139, %c0_140, %c0_141] : memref<1x1x128xf32, #tpu.memory_space<vmem>>, vector<1x1x128xf32>
    %214 = vector.shape_cast %213 : vector<1x1x128xf32> to vector<1x128xf32>
    %215 = vector.broadcast %214 : vector<1x128xf32> to vector<8x128xf32>
    %216 = arith.addf %212, %215 : vector<8x128xf32>
    %cst_142 = arith.constant 0.000000e+00 : f32
    %217 = vector.broadcast %cst_142 : f32 to vector<8x128xf32>
    %218 = arith.maximumf %216, %217 : vector<8x128xf32>
    %c0_143 = arith.constant 0 : index
    %c0_144 = arith.constant 0 : index
    %c0_145 = arith.constant 0 : index
    %219 = vector.load %arg22[%c0_143, %c0_144, %c0_145] : memref<1x128x32xf32, #tpu.memory_space<vmem>>, vector<1x128x32xf32>
    %220 = vector.shape_cast %219 : vector<1x128x32xf32> to vector<128x32xf32>
    %cst_146 = arith.constant dense<0.000000e+00> : vector<8x32xf32>
    %221 = tpu.matmul %218, %220, %cst_146 {dimension_numbers = #tpu.dot_dimension_numbers<[1], [0], [0], [1], [0, 0, 1, 1], [], []>} : vector<8x128xf32>, vector<128x32xf32>, vector<8x32xf32> -> vector<8x32xf32>
    %c0_147 = arith.constant 0 : index
    %c0_148 = arith.constant 0 : index
    %c0_149 = arith.constant 0 : index
    %222 = vector.load %arg23[%c0_147, %c0_148, %c0_149] : memref<1x1x32xf32, #tpu.memory_space<vmem>>, vector<1x1x32xf32>
    %223 = vector.shape_cast %222 : vector<1x1x32xf32> to vector<1x32xf32>
    %224 = vector.broadcast %223 : vector<1x32xf32> to vector<8x32xf32>
    %225 = arith.addf %221, %224 : vector<8x32xf32>
    %c0_150 = arith.constant 0 : index
    %c0_151 = arith.constant 0 : index
    %226 = vector.load %arg27[%c0_150, %c0_151] : memref<8x32xf32, #tpu.memory_space<vmem>>, vector<8x32xf32>
    tpu.vector_store %arg27[%c0_150, %c0_151], %225 {strides = array<i32>} : memref<8x32xf32, #tpu.memory_space<vmem>>, vector<8x32xf32>,
    %c1_i32 = arith.constant 1 : i32
    %227 = arith.cmpi eq, %arg1, %c1_i32 : i32
    %228 = arith.extui %227 : i1 to i32
    %c0_i32_152 = arith.constant 0 : i32
    %229 = arith.cmpi ne, %228, %c0_i32_152 : i32
    scf.if %229 {
      %c0_153 = arith.constant 0 : index
      %c0_154 = arith.constant 0 : index
      %230 = vector.load %arg24[%c0_153, %c0_154] : memref<1x32xf32, #tpu.memory_space<vmem>>, vector<1x32xf32>
      %c0_155 = arith.constant 0 : index
      %c0_156 = arith.constant 0 : index
      %231 = vector.load %arg25[%c0_155, %c0_156] : memref<1x32xf32, #tpu.memory_space<vmem>>, vector<1x32xf32>
      %cst_157 = arith.constant dense<0.000000e+00> : vector<8xf32>
      %232 = vector.multi_reduction <add>, %225, %cst_157 [1] : vector<8x32xf32> to vector<8xf32>
      %233 = vector.shape_cast %232 : vector<8xf32> to vector<8x1xf32>
      %cst_158 = arith.constant 3.200000e+01 : f32
      %234 = vector.broadcast %cst_158 : f32 to vector<8x1xf32>
      %235 = arith.divf %233, %234 : vector<8x1xf32>
      %236 = vector.broadcast %235 : vector<8x1xf32> to vector<8x32xf32>
      %237 = arith.subf %225, %236 : vector<8x32xf32>
      %238 = arith.mulf %237, %237 : vector<8x32xf32>
      %cst_159 = arith.constant dense<0.000000e+00> : vector<8xf32>
      %239 = vector.multi_reduction <add>, %238, %cst_159 [1] : vector<8x32xf32> to vector<8xf32>
      %240 = vector.shape_cast %239 : vector<8xf32> to vector<8x1xf32>
      %cst_160 = arith.constant 3.200000e+01 : f32
      %241 = vector.broadcast %cst_160 : f32 to vector<8x1xf32>
      %242 = arith.divf %240, %241 : vector<8x1xf32>
      %243 = vector.broadcast %235 : vector<8x1xf32> to vector<8x32xf32>
      %244 = arith.subf %225, %243 : vector<8x32xf32>
      %cst_161 = arith.constant 9.99999993E-9 : f32
      %245 = vector.broadcast %cst_161 : f32 to vector<8x1xf32>
      %246 = arith.addf %242, %245 : vector<8x1xf32>
      %247 = math.rsqrt %246 : vector<8x1xf32>
      %248 = vector.broadcast %247 : vector<8x1xf32> to vector<8x32xf32>
      %249 = arith.mulf %244, %248 : vector<8x32xf32>
      %250 = vector.broadcast %230 : vector<1x32xf32> to vector<8x32xf32>
      %251 = arith.mulf %249, %250 : vector<8x32xf32>
      %252 = vector.broadcast %231 : vector<1x32xf32> to vector<8x32xf32>
      %253 = arith.addf %251, %252 : vector<8x32xf32>
      %c0_162 = arith.constant 0 : index
      %c0_163 = arith.constant 0 : index
      %c0_164 = arith.constant 0 : index
      %254 = vector.load %arg26[%c0_162, %c0_163, %c0_164] : memref<1x8x32xf32, #tpu.memory_space<vmem>>, vector<1x8x32xf32>
      %255 = vector.shape_cast %254 : vector<1x8x32xf32> to vector<8x32xf32>
      %256 = vector.shape_cast %253 : vector<8x32xf32> to vector<1x8x32xf32>
      tpu.vector_store %arg26[%c0_162, %c0_163, %c0_164], %256 {strides = array<i32>} : memref<1x8x32xf32, #tpu.memory_space<vmem>>, vector<1x8x32xf32>,
    } else {
    }
    return
  }
  func.func @transform_0(%arg0: i32, %arg1: i32) -> (i32, i32, i32) {
    %c0_i32 = arith.constant 0 : i32
    %c0_i32_0 = arith.constant 0 : i32
    %c0_i32_1 = arith.constant 0 : i32
    return %arg0, %c0_i32, %c0_i32_0 : i32, i32, i32
  }
  func.func @transform_1(%arg0: i32, %arg1: i32) -> (i32, i32) {
    %c0_i32 = arith.constant 0 : i32
    %c0_i32_0 = arith.constant 0 : i32
    %c0_i32_1 = arith.constant 0 : i32
    return %c0_i32, %c0_i32_0 : i32, i32
  }
  func.func @transform_2(%arg0: i32, %arg1: i32) -> (i32, i32, i32) {
    %c0_i32 = arith.constant 0 : i32
    %c0_i32_0 = arith.constant 0 : i32
    %c0_i32_1 = arith.constant 0 : i32
    %c0_i32_2 = arith.constant 0 : i32
    return %c0_i32, %c0_i32_0, %c0_i32_1 : i32, i32, i32
  }
  func.func @transform_3(%arg0: i32, %arg1: i32) -> (i32, i32, i32) {
    %c0_i32 = arith.constant 0 : i32
    %c0_i32_0 = arith.constant 0 : i32
    %c0_i32_1 = arith.constant 0 : i32
    %c0_i32_2 = arith.constant 0 : i32
    return %c0_i32, %c0_i32_0, %c0_i32_1 : i32, i32, i32
  }
  func.func @transform_4(%arg0: i32, %arg1: i32) -> (i32, i32, i32) {
    %c0_i32 = arith.constant 0 : i32
    %c0_i32_0 = arith.constant 0 : i32
    %c0_i32_1 = arith.constant 0 : i32
    return %arg1, %c0_i32, %c0_i32_0 : i32, i32, i32
  }
  func.func @transform_5(%arg0: i32, %arg1: i32) -> (i32, i32, i32) {
    %c0_i32 = arith.constant 0 : i32
    %c0_i32_0 = arith.constant 0 : i32
    %c0_i32_1 = arith.constant 0 : i32
    return %arg1, %c0_i32, %c0_i32_0 : i32, i32, i32
  }
  func.func @transform_6(%arg0: i32, %arg1: i32) -> (i32, i32, i32) {
    %c0_i32 = arith.constant 0 : i32
    %c0_i32_0 = arith.constant 0 : i32
    %c0_i32_1 = arith.constant 0 : i32
    return %arg1, %c0_i32, %c0_i32_0 : i32, i32, i32
  }
  func.func @transform_7(%arg0: i32, %arg1: i32) -> (i32, i32, i32) {
    %c0_i32 = arith.constant 0 : i32
    %c0_i32_0 = arith.constant 0 : i32
    %c0_i32_1 = arith.constant 0 : i32
    return %arg1, %c0_i32, %c0_i32_0 : i32, i32, i32
  }
  func.func @transform_8(%arg0: i32, %arg1: i32) -> (i32, i32, i32) {
    %c0_i32 = arith.constant 0 : i32
    %c0_i32_0 = arith.constant 0 : i32
    %c0_i32_1 = arith.constant 0 : i32
    return %arg1, %c0_i32, %c0_i32_0 : i32, i32, i32
  }
  func.func @transform_9(%arg0: i32, %arg1: i32) -> (i32, i32, i32) {
    %c0_i32 = arith.constant 0 : i32
    %c0_i32_0 = arith.constant 0 : i32
    %c0_i32_1 = arith.constant 0 : i32
    return %arg1, %c0_i32, %c0_i32_0 : i32, i32, i32
  }
  func.func @transform_10(%arg0: i32, %arg1: i32) -> (i32, i32, i32) {
    %c0_i32 = arith.constant 0 : i32
    %c0_i32_0 = arith.constant 0 : i32
    %c0_i32_1 = arith.constant 0 : i32
    return %arg1, %c0_i32, %c0_i32_0 : i32, i32, i32
  }
  func.func @transform_11(%arg0: i32, %arg1: i32) -> (i32, i32, i32) {
    %c0_i32 = arith.constant 0 : i32
    %c0_i32_0 = arith.constant 0 : i32
    %c0_i32_1 = arith.constant 0 : i32
    return %arg1, %c0_i32, %c0_i32_0 : i32, i32, i32
  }
  func.func @transform_12(%arg0: i32, %arg1: i32) -> (i32, i32, i32) {
    %c0_i32 = arith.constant 0 : i32
    %c0_i32_0 = arith.constant 0 : i32
    %c0_i32_1 = arith.constant 0 : i32
    return %arg1, %c0_i32, %c0_i32_0 : i32, i32, i32
  }
  func.func @transform_13(%arg0: i32, %arg1: i32) -> (i32, i32, i32) {
    %c0_i32 = arith.constant 0 : i32
    %c0_i32_0 = arith.constant 0 : i32
    %c0_i32_1 = arith.constant 0 : i32
    return %arg1, %c0_i32, %c0_i32_0 : i32, i32, i32
  }
  func.func @transform_14(%arg0: i32, %arg1: i32) -> (i32, i32, i32) {
    %c0_i32 = arith.constant 0 : i32
    %c0_i32_0 = arith.constant 0 : i32
    %c0_i32_1 = arith.constant 0 : i32
    return %arg1, %c0_i32, %c0_i32_0 : i32, i32, i32
  }
  func.func @transform_15(%arg0: i32, %arg1: i32) -> (i32, i32, i32) {
    %c0_i32 = arith.constant 0 : i32
    %c0_i32_0 = arith.constant 0 : i32
    %c0_i32_1 = arith.constant 0 : i32
    return %arg1, %c0_i32, %c0_i32_0 : i32, i32, i32
  }
  func.func @transform_16(%arg0: i32, %arg1: i32) -> (i32, i32, i32) {
    %c0_i32 = arith.constant 0 : i32
    %c0_i32_0 = arith.constant 0 : i32
    %c0_i32_1 = arith.constant 0 : i32
    return %arg1, %c0_i32, %c0_i32_0 : i32, i32, i32
  }
  func.func @transform_17(%arg0: i32, %arg1: i32) -> (i32, i32, i32) {
    %c0_i32 = arith.constant 0 : i32
    %c0_i32_0 = arith.constant 0 : i32
    %c0_i32_1 = arith.constant 0 : i32
    return %arg1, %c0_i32, %c0_i32_0 : i32, i32, i32
  }
  func.func @transform_18(%arg0: i32, %arg1: i32) -> (i32, i32, i32) {
    %c0_i32 = arith.constant 0 : i32
    %c0_i32_0 = arith.constant 0 : i32
    %c0_i32_1 = arith.constant 0 : i32
    return %arg1, %c0_i32, %c0_i32_0 : i32, i32, i32
  }
  func.func @transform_19(%arg0: i32, %arg1: i32) -> (i32, i32, i32) {
    %c0_i32 = arith.constant 0 : i32
    %c0_i32_0 = arith.constant 0 : i32
    %c0_i32_1 = arith.constant 0 : i32
    return %arg1, %c0_i32, %c0_i32_0 : i32, i32, i32
  }
  func.func @transform_20(%arg0: i32, %arg1: i32) -> (i32, i32, i32) {
    %c0_i32 = arith.constant 0 : i32
    %c0_i32_0 = arith.constant 0 : i32
    %c0_i32_1 = arith.constant 0 : i32
    return %arg1, %c0_i32, %c0_i32_0 : i32, i32, i32
  }
  func.func @transform_21(%arg0: i32, %arg1: i32) -> (i32, i32, i32) {
    %c0_i32 = arith.constant 0 : i32
    %c0_i32_0 = arith.constant 0 : i32
    %c0_i32_1 = arith.constant 0 : i32
    return %arg1, %c0_i32, %c0_i32_0 : i32, i32, i32
  }
  func.func @transform_22(%arg0: i32, %arg1: i32) -> (i32, i32) {
    %c0_i32 = arith.constant 0 : i32
    %c0_i32_0 = arith.constant 0 : i32
    %c0_i32_1 = arith.constant 0 : i32
    return %c0_i32, %c0_i32_0 : i32, i32
  }
  func.func @transform_23(%arg0: i32, %arg1: i32) -> (i32, i32) {
    %c0_i32 = arith.constant 0 : i32
    %c0_i32_0 = arith.constant 0 : i32
    %c0_i32_1 = arith.constant 0 : i32
    return %c0_i32, %c0_i32_0 : i32, i32
  }
  func.func @transform_24(%arg0: i32, %arg1: i32) -> (i32, i32, i32) {
    %c0_i32 = arith.constant 0 : i32
    %c0_i32_0 = arith.constant 0 : i32
    %c0_i32_1 = arith.constant 0 : i32
    return %arg0, %c0_i32, %c0_i32_0 : i32, i32, i32
  }
}

</mosaic_0001>

<bundles_post_ra>
// kernel: tpu_custom_call.1
= control target key start
LH: loop header
LB: loop body
LE: loop exit
PB: predicated region body
PF: predicated region fallthrough
CT: control target
= control target key end

     0   :  { %s5420_s0 = inlined_call_operand.vmem [shape: f32[2,8,32], index: 0, kind: input, shape index: {}]   ;;  %s5421_s1 = inlined_call_operand.vmem [shape: f32[32,32], index: 1, kind: input, shape index: {}]   ;;  %s5422_s2 = inlined_call_operand.vmem [shape: f32[4,32,8], index: 2, kind: input, shape index: {}]   ;;  %s5423_s3 = inlined_call_operand.vmem [shape: f32[4,8,32], index: 3, kind: input, shape index: {}]   ;;  %s5424_s4 = inlined_call_operand.vmem [shape: f32[2,1,32], index: 4, kind: input, shape index: {}]   ;;  %s5425_s5 = inlined_call_operand.vmem [shape: f32[2,1,32], index: 5, kind: input, shape index: {}]   ;;  %s5426_s6 = inlined_call_operand.vmem [shape: f32[2,32,32], index: 6, kind: input, shape index: {}]   ;;  %s5427_s7 = inlined_call_operand.vmem [shape: f32[2,1,32], index: 7, kind: input, shape index: {}]   ;;  %s5428_s8 = inlined_call_operand.vmem [shape: f32[2,32,32], index: 8, kind: input, shape index: {}]   ;;  %s5429_s9 = inlined_call_operand.vmem [shape: f32[2,1,32], index: 9, kind: input, shape index: {}]   ;;  %s5430_s10 = inlined_call_operand.vmem [shape: f32[2,32,32], index: 10, kind: input, shape index: {}]   ;;  %s5431_s11 = inlined_call_operand.vmem [shape: f32[2,1,32], index: 11, kind: input, shape index: {}]   ;;  %s5432_s12 = inlined_call_operand.vmem [shape: f32[2,32,32], index: 12, kind: input, shape index: {}]   ;;  %s5433_s13 = inlined_call_operand.vmem [shape: f32[2,1,32], index: 13, kind: input, shape index: {}]   ;;  %s5434_s14 = inlined_call_operand.vmem [shape: f32[2,1,32], index: 14, kind: input, shape index: {}]   ;;  %s5435_s15 = inlined_call_operand.vmem [shape: f32[2,1,32], index: 15, kind: input, shape index: {}]   ;;  %s5436_s16 = inlined_call_operand.vmem [shape: f32[2,1,32], index: 16, kind: input, shape index: {}]   ;;  %s5437_s17 = inlined_call_operand.vmem [shape: f32[2,1,32], index: 17, kind: input, shape index: {}]   ;;  %s5438_s18 = inlined_call_operand.vmem [shape: f32[2,32,128], index: 18, kind: input, shape index: {}]   ;;  %s5439_s19 = inlined_call_operand.vmem [shape: f32[2,1,128], index: 19, kind: input, shape index: {}]   ;;  %s5440_s20 = inlined_call_operand.vmem [shape: f32[2,128,32], index: 20, kind: input, shape index: {}]   ;;  %s5441_s21 = inlined_call_operand.vmem [shape: f32[2,1,32], index: 21, kind: input, shape index: {}]   ;;  %s5442_s22 = inlined_call_operand.vmem [shape: f32[1,32], index: 22, kind: input, shape index: {}]   ;;  %s5443_s23 = inlined_call_operand.vmem [shape: f32[1,32], index: 23, kind: input, shape index: {}]   ;;  %s5444_s24 = inlined_call_operand.hbm [shape: f32[2,8,32], index: 24, kind: output, shape index: {}]  }
   0x1   :  { %5464 = sst [smem:[#allocation20_spill]] %s5420_s0 }
   0x2   :  { %5465 = sst [smem:[#allocation21_spill]] %s5421_s1 }
   0x3   :  { %5466 = sst [smem:[#allocation22_spill]] %s5422_s2 }
   0x4   :  { %5467 = sst [smem:[#allocation23_spill]] %s5423_s3 }
   0x5   :  { %5468 = sst [smem:[#allocation24_spill]] %s5424_s4 }
   0x6   :  { %5469 = sst [smem:[#allocation25_spill]] %s5425_s5 }
   0x7   :  { %5470 = sst [smem:[#allocation26_spill]] %s5426_s6 }
   0x8   :  { %5471 = sst [smem:[#allocation27_spill]] %s5427_s7 }
   0x9   :  { %5472 = sst [smem:[#allocation28_spill]] %s5428_s8 }
   0xa   :  { %5473 = sst [smem:[#allocation29_spill]] %s5429_s9 }
   0xb   :  { %5474 = sst [smem:[#allocation30_spill]] %s5430_s10 }
   0xc   :  { %5475 = sst [smem:[#allocation31_spill]] %s5432_s12 }
   0xd   :  { %5476 = sst [smem:[#allocation32_spill]] %s5435_s15 }
   0xe   :  { %5477 = sst [smem:[#allocation33_spill]] %s5436_s16 }
   0xf   :  { %5478 = sst [smem:[#allocation34_spill]] %s5439_s19 }
  0x10   :  { %5479 = sst [smem:[#allocation35_spill]] %s5440_s20 }
  0x11   :  { %5480 = sst [smem:[#allocation36_spill]] %s5441_s21 }
  0x12   :  { %5481 = sst [smem:[#allocation37_spill]] %s5442_s22 }
  0x13   :  { %5482 = sst [smem:[#allocation38_spill]] %s5443_s23 }
  0x14   :  { %5483 = sst [smem:[#allocation39_spill]] %s5444_s24 }
  0x15   :  { %29 = vsyncpa [#allocation4], 0 }
  0x16   :  { %31 = vsyncpa [#allocation4 + $0x1], 0  ;;  %s4737_s5 = smov 0   ;;  %s4739_s26 = smov 0  }
  0x17   :  { %s4741_s27 = smov 0   ;;  %s4743_s28 = smov 0  }
  0x18   :  { %s4745_s6 = smov 0   ;;  %s4747_s2 = smov 0  }
  0x19   :  { %s4749_s29 = smov 0   ;;  %s4751_s0 = smov 0  }
  0x1a LB: > { %5484 = sst [smem:[#allocation6_spill]] %s4576_s5  ;;  %s3872_s7 = sadd.s32 4294967295, %s4604_s0   ;;  %s4604_s0 = sphi %s4751_s0, %s37_s0   ;;  %s4600_s29 = sphi %s4749_s29, %s5554_s29   ;;  %s4596_s2 = sphi %s4747_s2, %s5553_s2   ;;  %s4592_s6 = sphi %s4745_s6, %s5552_s6   ;;  %s4588_s28 = sphi %s4743_s28, %s5551_s28   ;;  %s4584_s27 = sphi %s4741_s27, %s5550_s27   ;;  %s4580_s26 = sphi %s4739_s26, %s5549_s26   ;;  %s4576_s5 = sphi %s4737_s5, %s5548_s5  }
  0x1b   : > { %5485 = sst [smem:[#allocation7_spill]] %s4580_s26  ;;  %s3873_s30 = sadd.s32 4294967294, %s4604_s0  }
  0x1c   : > { %5486 = sst [smem:[#allocation8_spill]] %s4584_s27  ;;  %s46_s3 = sadd.s32 1, %s4596_s2 }
  0x1d   : > { %5487 = sst [smem:[#allocation9_spill]] %s4588_s28  ;;  %p47_p0 = scmp.ge.s32.totalorder %s46_s3, 2 }
  0x1e   : > { %5488 = sst [smem:[#allocation10_spill]] %s4592_s6  ;;  %s49_s25 = sadd.s32 1, %s4600_s29 }
  0x1f   : > { %5489 = sst [smem:[#allocation11_spill]] %s4596_s2  ;;  %p665_p1 = scmp.ne.s32.totalorder %s4584_s27, %s4580_s26 }
  0x20   : > { %5490 = sst [smem:[#allocation12_spill]] %s4600_s29  ;;  %p666_p2 = scmp.eq.s32.totalorder %s3872_s7, 3 }
  0x21   : > { %5491 = sst [smem:[#allocation13_spill]] %s4604_s0  ;;  %s5556_s3 = smov (%p47_p0, %s46_s3), 0 }
  0x22   : > { %5492 = sst [smem:[#allocation14_spill]] %s5556_s3  ;;  %s5558_s25 = smov (!%p47_p0, %s49_s25), %s4600_s29 }
  0x23   : > { %p4786_p3 = por %p666_p2, %p665_p1  ;;  %p671_p4 = scmp.ne.s32.totalorder %s4580_s26, %s4576_s5 }
  0x24   : > { %p51_p5 = scmp.ge.s32.totalorder %s5558_s25, 2  ;;  %p672_p6 = scmp.eq.s32.totalorder %s3873_s30, 3 }
  0x25   : > { %s5493_s8 = scalar_select %p4786_p3, 1, 0 }
  0x26   : > { %p3876_p7 = scmp.ge.s32.totalorder %s4604_s0, 1  ;;  %p832_p8 = scmp.lt.s32.totalorder %s4604_s0, 5 }
  0x27   : > { %5494 = sst [smem:[#allocation15_spill]] %s5493_s8  ;;  %s5560_s25 = smov (%p51_p5, %s5558_s25), 0 }
  0x28   : > { %5495 = sst [smem:[#allocation16_spill]] %s5560_s25  ;;  %p4796_p9 = por %p672_p6, %p671_p4 }
  0x29   : > { %p833_p10 = pnand %p3876_p7, %p832_p8  ;;  %s652_s1 = ssub.s32 %s4600_s29, %s5560_s25 }
  0x2a   : > { %s5496_s4 = scalar_select %p4796_p9, 1, 0 }
  0x2b   : > { %s655_s7 = sadd.s32 1, %s4584_s27  ;;  %p653_p11 = scmp.eq.s32.totalorder %s652_s1, 0 }
  0x2c   : > { %5497 = sst [smem:[#allocation17_spill]] %s5496_s4  ;;  %836 = sbr.rel (%p833_p10) target bundleno = 3789 (0xecd), region = 116 }
  0x2d   : > { %s4804_s3 = scalar_select %p653_p11, %s4584_s27, %s655_s7  }
  0x2f   : > { %5498 = sst [smem:[#allocation18_spill]] %s4804_s3 }
  0x31   : > { %s5453_s30 = sand.u32 1, %s4580_s26   ;;  %p963_p12 = scmp.lt.s32.totalorder %s4592_s6, 1 }
  0x32   : > { %s4810_s2 = sshll.u32 %s5453_s30, 3  ;;  %p967_p13 = scmp.lt.s32.totalorder %s4588_s28, 1 }
  0x33   : > { %s964_s4 = scalar_select %p963_p12, %s4592_s6, 1 }
  0x34   : > { %s4815_s5 = scalar_select %p967_p13, %s4588_s28, 1 }
  0x35   : > { %s3878_s1 = sshll.u32 %s964_s4, 3  ;;  %s5499_s29 = sld [smem:[#allocation20_spill]] }
  0x36   : > { %s3998_s22 = sshll.u32 %s4815_s5, 5  ;;  %s5502_s21 = sld [smem:[#allocation26_spill]] }
  0x37   : > { %s5504_s0 = sld [smem:[#allocation28_spill]]  ;;  %s4884_s27 = scalar_lea.vmem %s5438_s18, %s3998_s22 }
  0x38   : > { %s5506_s10 = sld [smem:[#allocation30_spill]]  ;;  %s962_s25 = scalar_lea.vmem [#allocation3], %s4810_s2 }
  0x39   : > { %s5507_s12 = sld [smem:[#allocation31_spill]] }
  0x3a   : > { %s5511_s6 = sld [smem:[#allocation34_spill]] }
  0x3b   : > { %s966_s30 = scalar_lea.vmem %s5499_s29, %s3878_s1  ;;  %s1016_s29 = scalar_lea.vmem %s5437_s17, %s4815_s5 }
  0x3c   : > { %s4832_s4 = scalar_lea.vmem %s5502_s21, %s3998_s22  ;;  %s4003_s1 = sshll.u32 %s4815_s5, 7 }
  0x3d   : > { %s4841_s3 = scalar_lea.vmem %s5504_s0, %s3998_s22  ;;  %s5513_s28 = sld [smem:[#allocation35_spill]] }
  0x3e   : > { %s4850_s20 = scalar_lea.vmem %s5506_s10, %s3998_s22  ;;  %s5512_s10 = sld [smem:[#allocation36_spill]] }
  0x3f   : > { %s4859_s19 = scalar_lea.vmem %s5507_s12, %s3998_s22  ;;  %s5514_s7 = sld [smem:[#allocation9_spill]] }
  0x40   : > { %5508 = sst [smem:[#allocation19_spill]] %s4859_s19  ;;  %s1024_s8 = scalar_lea.vmem %s5511_s6, %s4815_s5 }
  0x43   : > { %s4898_s16 = scalar_lea.vmem %s5513_s28, %s4003_s1 }
  0x44   : > { %s1032_s15 = scalar_lea.vmem %s5512_s10, %s4815_s5 }
  0x45   : > { %p3891_p0 = scmp.ne.s32.totalorder %s5514_s7, 0 }
  0x47   : > { %1036 = sbr.rel (%p3891_p0) target bundleno = 78 (0x4e), region = 120 }
  0x4c   : > { %v1037_v0 = vld [vmem:[%s966_s30] sm:$0xff]  ;;  %vm1038_vm0 = vcmask 261120  }
  0x4d   : > { %1039 = vst.msk [vmem:[#allocation2] sm:$0xff] %vm1038_vm0, %v1037_v0 }
  0x4e PF: > { %vm1043_vm1 = vcmask 261120   ;;  %v1243_v3 = vld [vmem:[%s4850_s20 + $0x18] sm:$0xff]  ;;  %v4606_v4 = vmov 0.0   ;;  %v1242_v5 = vld [vmem:[%s4850_s20 + $0x10] sm:$0xff]  ;;  %vm4607_vm2 = vmmov 0   ;;  %v1241_v6 = vld [vmem:[%s4850_s20 + $0x8] sm:$0xff]  ;;  %s5529_s9 = scalar_lea.vmem %s5433_s13, %s4815_s5 }
  0x4f   : > { %4167 = vmatprep.subr.mxu0 %v4606_v4  ;;  %4175 = vmatprep.mubr.msk.f32.mxu0 %vm4607_vm2, %v4606_v4  ;;  %v1240_v7 = vld [vmem:[%s4850_s20] sm:$0xff]  ;;  %v1075_v13 = vld [vmem:[%s4832_s4 + $0x18] sm:$0xff]  ;;  %v1074_v14 = vld [vmem:[%s4832_s4 + $0x10] sm:$0xff]  ;;  %s5515_s22 = sld [smem:[#allocation22_spill]]  ;;  %vm1334_vm3 = vcmask 64512   ;;  %s5516_s20 = scalar_lea.vmem %s5431_s11, %s4815_s5 }
  0x50   : > { %4168 = vmatpush3.msra.mxu0 %v1243_v3  ;;  %4145 = vmatprep.subr.mxu1 %v4606_v4  ;;  %v1073_v15 = vld [vmem:[%s4832_s4 + $0x8] sm:$0xff]  ;;  %v1072_v16 = vld [vmem:[%s4832_s4] sm:$0xff]  ;;  %s4608_s4 = smov 104   ;;  %s4609_s19 = smov 120   ;;  %v1159_v33 = vld [vmem:[%s4841_s3 + $0x18] sm:$0xff] }
  0x51   : > { %4169 = vmatprep.subr.mxu0 %v4606_v4  ;;  %4153 = vmatprep.mubr.msk.f32.mxu1 %vm4607_vm2, %v4606_v4  ;;  %v3898_v18 = vld [vmem:[%s5516_s20] ss:$0 sm:$0xff]  ;;  %s4610_s23 = smov 112   ;;  %s5517_s21 = sld [smem:[#allocation24_spill]]  ;;  %v1158_v34 = vld [vmem:[%s4841_s3 + $0x10] sm:$0xff]  ;;  %v1157_v35 = vld [vmem:[%s4841_s3 + $0x8] sm:$0xff] }
  0x52   : > { %4170 = vmatpush3.msra.mxu0 %v1242_v5  ;;  %4146 = vmatpush3.msra.mxu1 %v1075_v13  ;;  %s5519_s30 = sld [smem:[#allocation25_spill]]  ;;  %v1156_v36 = vld [vmem:[%s4841_s3] sm:$0xff] }
  0x53   : > { %4171 = vmatprep.subr.mxu0 %v4606_v4  ;;  %4147 = vmatprep.subr.mxu1 %v4606_v4  ;;  %s5521_s20 = sld [smem:[#allocation27_spill]] }
  0x54   : > { %v4902_v1 = vld [vmem:[#allocation2] sm:$0xff]  ;;  %4172 = vmatpush3.msra.mxu0 %v1241_v6  ;;  %4148 = vmatpush3.msra.mxu1 %v1074_v14  ;;  %s5523_s26 = sld [smem:[#allocation29_spill]] }
  0x55   : > { %v1044_v2 = vsel %vm1043_vm1, %v4902_v1, 0.0  ;;  %4173 = vmatprep.subr.mxu0 %v4606_v4  ;;  %4149 = vmatprep.subr.mxu1 %v4606_v4  ;;  %v4934_v17 = vld [vmem:[%s5515_s22] sm:$0xff]  ;;  %v4948_v22 = vld [vmem:[%s5515_s22 + $0x8] sm:$0xff]  ;;  %v4953_v23 = vld [vmem:[%s5515_s22 + $0x10] sm:$0xff] }
  0x56   : > { %1045 = vadd.xlane.f32.xlu0 %v1044_v2  ;;  %4174 = vmatpush3.msra.mxu0 %v1240_v7  ;;  %v4988_v37 = vld [vmem:[%s5515_s22 + $0x18] sm:$0xff]  ;;  %v4995_v39 = vld [vmem:[%s5515_s22 + $0x60] sm:$0xff]  ;;  %v5002_v40 = vld [vmem:[%s5515_s22 + $0x68] sm:$0xff] }
  0x57   : > { %4176 = vmatmul.mubr.msk.f32.vlgmr.msra.gmra.mxu0 %vm1043_vm1, %v4902_v1  ;;  %4150 = vmatpush3.msra.mxu1 %v1073_v15  ;;  %s5518_s7 = scalar_lea.vmem %s5517_s21, %s4815_s5  ;;  %v5009_v42 = vld [vmem:[%s5515_s22 + $0x20] sm:$0xff]  ;;  %v5014_v43 = vld [vmem:[%s5515_s22 + $0x28] sm:$0xff]  ;;  %v5021_v44 = vld [vmem:[%s5515_s22 + $0x30] sm:$0xff] }
  0x58   : > { %4151 = vmatprep.subr.mxu1 %v4606_v4  ;;  %4188 = vmatprep.mubr.msk.f32.mxu0 %vm1334_vm3, %v4934_v17  ;;  %v3892_v28 = vld [vmem:[%s5518_s7] ss:$0 sm:$0xff]  ;;  %s5520_s1 = scalar_lea.vmem %s5519_s30, %s4815_s5  ;;  %v5026_v45 = vld [vmem:[%s5515_s22 + $0x70] sm:$0xff]  ;;  %v5035_v46 = vld [vmem:[%s5515_s22 + $0x78] sm:$0xff]  ;;  %s5526_s30 = sld [smem:[#allocation19_spill]] }
  0x59   : > { %4152 = vmatpush3.msra.mxu1 %v1072_v16  ;;  %v3893_v30 = vld [vmem:[%s5520_s1] ss:$0 sm:$0xff]  ;;  %v5042_v48 = vld [vmem:[%s5515_s22 + $0x38] sm:$0xff]  ;;  %v5060_v50 = vld [vmem:[%s5515_s22 + $0x48] sm:$0xff]  ;;  %s5522_s28 = scalar_lea.vmem %s5521_s20, %s4815_s5 }
  0x5a   : > { %4156 = vmatprep.subr.mxu1 %v4606_v4  ;;  %v5049_v49 = vld [vmem:[%s5515_s22 + $0x40] sm:$0xff]  ;;  %v5065_v51 = vld [vmem:[%s5515_s22 + $0x50] sm:$0xff]  ;;  %v5074_v52 = vld [vmem:[%s5515_s22 + $0x58] sm:$0xff]  ;;  %s5524_s6 = scalar_lea.vmem %s5523_s26, %s4815_s5 }
  0x5b   : > { %v3894_v53 = vld [vmem:[%s5522_s28] ss:$0 sm:$0xff]  ;;  %s5527_s28 = sld [smem:[#allocation23_spill]] }
  0x5c   : > { %v3896_v57 = vld [vmem:[%s5524_s6] ss:$0 sm:$0xff]  ;;  %s5533_s6 = sld [smem:[#allocation33_spill]] }
  0x61   : > { %s5528_s3 = smov %s5527_s28 }
  0xdf   : > { %v1046_v8 = vpop.xlane.xlu0 %1045 }
  0xe0   : > { %v1048_v9 = vmul.f32 0.03125, %v1046_v8 }
  0xe2   : > { %v1049_v10 = vsub.f32 %v4902_v1, %v1048_v9 }
  0xe4   : > { %v1050_v11 = vmul.f32 %v1049_v10, %v1049_v10 }
  0xe6   : > { %v1051_v12 = vsel %vm1043_vm1, %v1050_v11, 0.0 }
  0xe7   : > { %1052 = vadd.xlane.f32.xlu0 %v1051_v12 }
 0x117   : > { %v1317_v19 = vpop.f32.mrf.mxu0 }
 0x118   : > { %v1318_v20 = vadd.f32 %v3898_v18, %v1317_v19 }
 0x119   : > { %v4177_v21 = vpop.f32.mrf.mxu0 }
 0x11a   : > { %1643 = vrot.lane.b32.xlu0 %v1318_v20, %s4608_s4  ;;  %1331 = vrot.lane.b32.xlu1 %v1318_v20, %s4609_s19 }
 0x11b   : > { %4186 = vmatprep.subr.mxu0 %v1318_v20 }
 0x11c   : > { %4187 = vmatpush3.msra.mxu0 %v1318_v20 }
 0x11d   : > { %4189 = vmatmul.mubr.msk.f32.vlgmr.msra.gmra.mxu0 %vm1334_vm3, %v4948_v22 }
 0x11e   : > { %1534 = vrot.lane.b32.xlu1 %v1318_v20, %s4610_s23  ;;  %4191 = vmatprep.mubr.msk.f32.mxu0 %vm1334_vm3, %v4953_v23 }
 0x121   : > { %4192 = vmatmul.mubr.msk.f32.gmra.mxu0 %vm1334_vm3, %v4988_v37 }
 0x122   : > { %4204 = vmatprep.mubr.msk.f32.mxu0 %vm1334_vm3, %v4995_v39 }
 0x170   : > { %v1053_v24 = vpop.xlane.xlu0 %1052 }
 0x171   : > { %v1054_v25 = vmul.f32 0.03125, %v1053_v24 }
 0x173   : > { %v1055_v26 = vadd.f32 1e-08, %v1054_v25 }
 0x175   : > { %4488 = vrsqrt.f32 %v1055_v26 }
 0x182   : > { %v4489_v27 = vpop.eup %4488 }
 0x183   : > { %v1057_v29 = vmul.f32 %v4489_v27, %v1049_v10 }
 0x185   : > { %v1064_v31 = vmul.f32 %v3892_v28, %v1057_v29 }
 0x187   : > { %v4970_v32 = vadd.f32 %v3893_v30, %v1064_v31 }
 0x189   : > { %4154 = vmatmul.mubr.msk.f32.vlgmr.msra.gmra.mxu1 %vm1043_vm1, %v4970_v32 }
 0x18a   : > { %4157 = vmatpush3.msra.mxu1 %v1159_v33  ;;  %4164 = vmatprep.mubr.msk.f32.mxu1 %vm4607_vm2, %v4606_v4 }
 0x18b   : > { %4158 = vmatprep.subr.mxu1 %v4606_v4 }
 0x18c   : > { %4159 = vmatpush3.msra.mxu1 %v1158_v34  ;;  %v1644_v38 = vpop.permute.xlu0 %1643  ;;  %v1332_v41 = vpop.permute.xlu1 %1331 }
 0x18d   : > { %4160 = vmatprep.subr.mxu1 %v4606_v4  ;;  %4202 = vmatprep.subr.mxu0 %v1644_v38 }
 0x18e   : > { %4161 = vmatpush3.msra.mxu1 %v1157_v35  ;;  %4203 = vmatpush3.msra.mxu0 %v1644_v38 }
 0x18f   : > { %4162 = vmatprep.subr.mxu1 %v4606_v4  ;;  %4205 = vmatmul.mubr.msk.f32.vlgmr.msra.gmra.mxu0 %vm1334_vm3, %v5002_v40 }
 0x190   : > { %4163 = vmatpush3.msra.mxu1 %v1156_v36  ;;  %4207 = vmatprep.mubr.msk.f32.mxu0 %vm1334_vm3, %v5026_v45  ;;  %v1535_v47 = vpop.permute.xlu1 %1534 }
 0x191   : > { %4165 = vmatmul.mubr.msk.f32.vlgmr.msra.gmra.mxu1 %vm1043_vm1, %v4902_v1  ;;  %4178 = vmatprep.subr.mxu1 %v1332_v41 }
 0x192   : > { %4180 = vmatprep.mubr.msk.f32.mxu1 %vm1334_vm3, %v5009_v42  ;;  %4179 = vmatpush3.msra.mxu1 %v1332_v41 }
 0x193   : > { %4208 = vmatmul.mubr.msk.f32.gmra.mxu0 %vm1334_vm3, %v5035_v46  ;;  %4194 = vmatprep.subr.mxu1 %v1535_v47 }
 0x194   : > { %4220 = vmatprep.mubr.msk.f32.mxu0 %vm1334_vm3, %v4934_v17 }
 0x195   : > { %4181 = vmatmul.mubr.msk.f32.vlgmr.msra.gmra.mxu1 %vm1334_vm3, %v5014_v43 }
 0x196   : > { %4183 = vmatprep.mubr.msk.f32.mxu1 %vm1334_vm3, %v5021_v44  ;;  %4195 = vmatpush3.msra.mxu1 %v1535_v47 }
 0x199   : > { %4184 = vmatmul.mubr.msk.f32.gmra.mxu1 %vm1334_vm3, %v5042_v48 }
 0x19a   : > { %4196 = vmatprep.mubr.msk.f32.mxu1 %vm1334_vm3, %v5049_v49 }
 0x19d   : > { %4197 = vmatmul.mubr.msk.f32.vlgmr.msra.gmra.mxu1 %vm1334_vm3, %v5060_v50 }
 0x19e   : > { %4199 = vmatprep.mubr.msk.f32.mxu1 %vm1334_vm3, %v5065_v51 }
 0x1a1   : > { %4200 = vmatmul.mubr.msk.f32.gmra.mxu1 %vm1334_vm3, %v5074_v52 }
 0x1a2   : > { %4212 = vmatprep.mubr.msk.f32.mxu1 %vm1334_vm3, %v5009_v42 }
 0x1dd   : > { %v4190_v61 = vpop.f32.mrf.mxu0 }
 0x1df   : > { %v1510_v62 = vpop.f32.mrf.mxu0 }
 0x1e1   : > { %v4193_v2 = vpop.f32.mrf.mxu0 }
 0x1e3   : > { %v1520_v8 = vpop.f32.mrf.mxu0 }
 0x249   : > { %v1152_v54 = vpop.f32.mrf.mxu1 }
 0x24a   : > { %v1153_v55 = vadd.f32 %v3894_v53, %v1152_v54 }
 0x24b   : > { %v4155_v56 = vpop.f32.mrf.mxu1 }
 0x24c   : > { %1748 = vrot.lane.b32.xlu1 %v1153_v55, %s4609_s19  ;;  %4218 = vmatprep.subr.mxu0 %v1153_v55 }
 0x24d   : > { %4219 = vmatpush3.msra.mxu0 %v1153_v55 }
 0x24e   : > { %4221 = vmatmul.mubr.msk.f32.vlgmr.msra.gmra.mxu0 %vm1334_vm3, %v4948_v22 }
 0x24f   : > { %4223 = vmatprep.mubr.msk.f32.mxu0 %vm1334_vm3, %v4953_v23  ;;  %v4206_v12 = vpop.f32.mrf.mxu0 }
 0x250   : > { %1921 = vrot.lane.b32.xlu1 %v1153_v55, %s4610_s23 }
 0x251   : > { %v1236_v58 = vpop.f32.mrf.mxu1 }
 0x252   : > { %4224 = vmatmul.mubr.msk.f32.gmra.mxu0 %vm1334_vm3, %v4988_v37  ;;  %v1237_v60 = vadd.f32 %v3896_v57, %v1236_v58 }
 0x253   : > { %4236 = vmatprep.mubr.msk.f32.mxu0 %vm1334_vm3, %v4995_v39  ;;  %v4166_v59 = vpop.f32.mrf.mxu1 }
 0x254   : > { %2013 = vrot.lane.b32.xlu1 %v1153_v55, %s4608_s4 }
 0x255   : > { %v4182_v63 = vpop.f32.mrf.mxu1 }
 0x256   : > { %v1516_v5 = vadd.f32 %v4190_v61, %v4182_v63 }
 0x257   : > { %v1413_v0 = vpop.f32.mrf.mxu1 }
 0x258   : > { %2106 = vrot.lane.b32.xlu1 %v1237_v60, %s4609_s19  ;;  %v1511_v20 = vadd.f32 %v1510_v62, %v1413_v0 }
 0x259   : > { %v4185_v3 = vpop.f32.mrf.mxu1 }
 0x25a   : > { %v5104_v6 = vadd.f32 %v4193_v2, %v4185_v3 }
 0x25b   : > { %v1423_v7 = vpop.f32.mrf.mxu1 }
 0x25c   : > { %2279 = vrot.lane.b32.xlu1 %v1237_v60, %s4610_s23  ;;  %v5106_v9 = vadd.f32 %v1520_v8, %v1423_v7  ;;  %s5525_s23 = sld [smem:[#allocation21_spill]] }
 0x25d   : > { %v4198_v10 = vpop.f32.mrf.mxu1 }
 0x25e   : > { %v1635_v11 = vadd.f32 %v4198_v10, %v1516_v5 }
 0x25f   : > { %v1615_v21 = vpop.f32.mrf.mxu1 }
 0x260   : > { %2371 = vrot.lane.b32.xlu1 %v1237_v60, %s4608_s4  ;;  %v5108_v13 = vadd.f32 %v4206_v12, %v1635_v11  ;;  %s5534_s4 = scalar_lea.vmem %s5533_s6, %s4815_s5 }
 0x261   : > { %v4201_v28 = vpop.f32.mrf.mxu1 }
 0x262   : > { %v1637_v59 = vadd.f32 %v4201_v28, %v5104_v6  ;;  %v2577_v28 = vld [vmem:[%s5525_s23 + $0x8] sm:$0xff] }
 0x263   : > { %v1625_v30 = vpop.f32.mrf.mxu1  ;;  %vm2581_vm4 = vcmp.ne.f32.partialorder %v2577_v28, 0.0 }
 0x264   : > { %v1636_v58 = vadd.f32 %v1625_v30, %v5106_v9 }
 0x2be   : > { %v1749_v14 = vpop.permute.xlu1 %1748 }
 0x2bf   : > { %4210 = vmatprep.subr.mxu1 %v1749_v14 }
 0x2c0   : > { %4211 = vmatpush3.msra.mxu1 %v1749_v14 }
 0x2c1   : > { %4213 = vmatmul.mubr.msk.f32.vlgmr.msra.gmra.mxu1 %vm1334_vm3, %v5014_v43 }
 0x2c2   : > { %v1922_v15 = vpop.permute.xlu1 %1921  ;;  %4215 = vmatprep.mubr.msk.f32.mxu1 %vm1334_vm3, %v5021_v44 }
 0x2c3   : > { %4226 = vmatprep.subr.mxu1 %v1922_v15 }
 0x2c4   : > { %4227 = vmatpush3.msra.mxu1 %v1922_v15 }
 0x2c5   : > { %4216 = vmatmul.mubr.msk.f32.gmra.mxu1 %vm1334_vm3, %v5042_v48 }
 0x2c6   : > { %v2014_v16 = vpop.permute.xlu1 %2013  ;;  %4228 = vmatprep.mubr.msk.f32.mxu1 %vm1334_vm3, %v5049_v49 }
 0x2c7   : > { %4234 = vmatprep.subr.mxu0 %v2014_v16 }
 0x2c8   : > { %4235 = vmatpush3.msra.mxu0 %v2014_v16 }
 0x2c9   : > { %4229 = vmatmul.mubr.msk.f32.vlgmr.msra.gmra.mxu1 %vm1334_vm3, %v5060_v50  ;;  %4237 = vmatmul.mubr.msk.f32.vlgmr.msra.gmra.mxu0 %vm1334_vm3, %v5002_v40 }
 0x2ca   : > { %4231 = vmatprep.mubr.msk.f32.mxu1 %vm1334_vm3, %v5065_v51  ;;  %4239 = vmatprep.mubr.msk.f32.mxu0 %vm1334_vm3, %v5026_v45  ;;  %v2107_v18 = vpop.permute.xlu1 %2106 }
 0x2cb   : > { %4250 = vmatprep.subr.mxu0 %v1237_v60  ;;  %4242 = vmatprep.subr.mxu1 %v2107_v18 }
 0x2cc   : > { %4251 = vmatpush3.msra.mxu0 %v1237_v60  ;;  %4243 = vmatpush3.msra.mxu1 %v2107_v18 }
 0x2cd   : > { %4232 = vmatmul.mubr.msk.f32.gmra.mxu1 %vm1334_vm3, %v5074_v52  ;;  %4240 = vmatmul.mubr.msk.f32.gmra.mxu0 %vm1334_vm3, %v5035_v46 }
 0x2ce   : > { %4244 = vmatprep.mubr.msk.f32.mxu1 %vm1334_vm3, %v5009_v42  ;;  %v2280_v19 = vpop.permute.xlu1 %2279  ;;  %4252 = vmatprep.mubr.msk.f32.mxu0 %vm1334_vm3, %v4934_v17  ;;  %v1634_v17 = vadd.f32 %v1615_v21, %v1511_v20 }
 0x2cf   : > { %4258 = vmatprep.subr.mxu1 %v2280_v19 }
 0x2d1   : > { %4245 = vmatmul.mubr.msk.f32.vlgmr.msra.gmra.mxu1 %vm1334_vm3, %v5014_v43  ;;  %4253 = vmatmul.mubr.msk.f32.vlgmr.msra.gmra.mxu0 %vm1334_vm3, %v4948_v22  ;;  %v1724_v22 = vpop.f32.mrf.mxu0 }
 0x2d2   : > { %4247 = vmatprep.mubr.msk.f32.mxu1 %vm1334_vm3, %v5021_v44  ;;  %4259 = vmatpush3.msra.mxu1 %v2280_v19  ;;  %v1743_v24 = vadd.f32 %v1724_v22, %v1634_v17 }
 0x2d3   : > { %4255 = vmatprep.mubr.msk.f32.mxu0 %vm1334_vm3, %v4953_v23  ;;  %v2372_v23 = vpop.permute.xlu1 %2371  ;;  %v4209_v25 = vpop.f32.mrf.mxu0 }
 0x2d4   : > { %4266 = vmatprep.subr.mxu0 %v2372_v23  ;;  %v1746_v61 = vadd.f32 %v4209_v25, %v1637_v59 }
 0x2d5   : > { %4248 = vmatmul.mubr.msk.f32.gmra.mxu1 %vm1334_vm3, %v5042_v48  ;;  %4256 = vmatmul.mubr.msk.f32.gmra.mxu0 %vm1334_vm3, %v4988_v37  ;;  %v1734_v26 = vpop.f32.mrf.mxu0 }
 0x2d6   : > { %4260 = vmatprep.mubr.msk.f32.mxu1 %vm1334_vm3, %v5049_v49  ;;  %4268 = vmatprep.mubr.msk.f32.mxu0 %vm1334_vm3, %v4995_v39  ;;  %v1745_v60 = vadd.f32 %v1734_v26, %v1636_v58 }
 0x2d7   : > { %4267 = vmatpush3.msra.mxu0 %v2372_v23 }
 0x2d9   : > { %4261 = vmatmul.mubr.msk.f32.vlgmr.msra.gmra.mxu1 %vm1334_vm3, %v5060_v50  ;;  %4269 = vmatmul.mubr.msk.f32.vlgmr.msra.gmra.mxu0 %vm1334_vm3, %v5002_v40 }
 0x2da   : > { %4263 = vmatprep.mubr.msk.f32.mxu1 %vm1334_vm3, %v5065_v51  ;;  %4271 = vmatprep.mubr.msk.f32.mxu0 %vm1334_vm3, %v5026_v45 }
 0x2dd   : > { %4264 = vmatmul.mubr.msk.f32.gmra.mxu1 %vm1334_vm3, %v5074_v52  ;;  %4272 = vmatmul.mubr.msk.f32.gmra.mxu0 %vm1334_vm3, %v5035_v46 }
 0x2de   : > { %4282 = vmatprep.mubr.msk.f32.mxu1 %vm1334_vm3, %v1743_v24 }
 0x30e   : > { %v4222_v27 = vpop.f32.mrf.mxu0 }
 0x310   : > { %v1902_v29 = vpop.f32.mrf.mxu0 }
 0x312   : > { %v4225_v33 = vpop.f32.mrf.mxu0 }
 0x314   : > { %v1912_v36 = vpop.f32.mrf.mxu0 }
 0x381   : > { %v4214_v31 = vpop.f32.mrf.mxu1 }
 0x382   : > { %v1908_v48 = vadd.f32 %v4222_v27, %v4214_v31 }
 0x383   : > { %v1817_v34 = vpop.f32.mrf.mxu1 }
 0x384   : > { %v1903_v54 = vadd.f32 %v1902_v29, %v1817_v34  ;;  %v2576_v29 = vld [vmem:[%s5525_s23] sm:$0xff] }
 0x385   : > { %v4217_v35 = vpop.f32.mrf.mxu1  ;;  %vm2580_vm5 = vcmp.ne.f32.partialorder %v2576_v29, 0.0 }
 0x386   : > { %v1918_v42 = vadd.f32 %v4225_v33, %v4217_v35 }
 0x387   : > { %v1827_v37 = vpop.f32.mrf.mxu1 }
 0x388   : > { %v1913_v45 = vadd.f32 %v1912_v36, %v1827_v37  ;;  %v2578_v36 = vld [vmem:[%s5525_s23 + $0x10] sm:$0xff] }
 0x389   : > { %v4230_v38 = vpop.f32.mrf.mxu1  ;;  %v4238_v39 = vpop.f32.mrf.mxu0  ;;  %vm2582_vm6 = vcmp.ne.f32.partialorder %v2578_v36, 0.0 }
 0x38a   : > { %v2010_v52 = vadd.f32 %v4230_v38, %v1908_v48 }
 0x38b   : > { %v1990_v40 = vpop.f32.mrf.mxu1  ;;  %v2082_v41 = vpop.f32.mrf.mxu0 }
 0x38c   : > { %v2009_v55 = vadd.f32 %v1990_v40, %v1903_v54  ;;  %v2102_v56 = vadd.f32 %v4238_v39, %v2010_v52  ;;  %v2579_v40 = vld [vmem:[%s5525_s23 + $0x18] sm:$0xff] }
 0x38d   : > { %v4233_v43 = vpop.f32.mrf.mxu1  ;;  %v4241_v44 = vpop.f32.mrf.mxu0  ;;  %vm2583_vm7 = vcmp.ne.f32.partialorder %v2579_v40, 0.0 }
 0x38e   : > { %v2012_v46 = vadd.f32 %v4233_v43, %v1918_v42  ;;  %v2101_v57 = vadd.f32 %v2082_v41, %v2009_v55 }
 0x38f   : > { %v2000_v47 = vpop.f32.mrf.mxu1  ;;  %v2092_v51 = vpop.f32.mrf.mxu0 }
 0x390   : > { %v2011_v49 = vadd.f32 %v2000_v47, %v1913_v45  ;;  %v2104_v50 = vadd.f32 %v4241_v44, %v2012_v46 }
 0x391   : > { %v4246_v62 = vpop.f32.mrf.mxu1  ;;  %v4254_v2 = vpop.f32.mrf.mxu0 }
 0x392   : > { %v2103_v53 = vadd.f32 %v2092_v51, %v2011_v49  ;;  %4274 = vmatprep.subr.msk.mxu1 %vm1334_vm3, %v2104_v50  ;;  %v2266_v12 = vadd.f32 %v4254_v2, %v4246_v62 }
 0x393   : > { %4275 = vmatpush3.xpose.msk.msra.mxu1 %vm1334_vm3, %v2104_v50  ;;  %v2175_v63 = vpop.f32.mrf.mxu1  ;;  %v2260_v5 = vpop.f32.mrf.mxu0 }
 0x394   : > { %4276 = vmatprep.subr.msk.mxu1 %vm1334_vm3, %v2103_v53  ;;  %v2261_v16 = vadd.f32 %v2260_v5, %v2175_v63 }
 0x395   : > { %v4249_v0 = vpop.f32.mrf.mxu1  ;;  %v4257_v7 = vpop.f32.mrf.mxu0 }
 0x396   : > { %v2276_v11 = vadd.f32 %v4257_v7, %v4249_v0 }
 0x397   : > { %4277 = vmatpush3.xpose.msk.msra.mxu1 %vm1334_vm3, %v2103_v53  ;;  %v2185_v3 = vpop.f32.mrf.mxu1  ;;  %v2270_v9 = vpop.f32.mrf.mxu0 }
 0x398   : > { %4278 = vmatprep.subr.msk.mxu1 %vm1334_vm3, %v2102_v56 }
 0x399   : > { %v4262_v6 = vpop.f32.mrf.mxu1  ;;  %v4270_v14 = vpop.f32.mrf.mxu0 }
 0x39a   : > { %v2368_v20 = vadd.f32 %v4262_v6, %v2266_v12 }
 0x39b   : > { %4279 = vmatpush3.xpose.msk.msra.mxu1 %vm1334_vm3, %v2102_v56  ;;  %v2348_v8 = vpop.f32.mrf.mxu1  ;;  %v2440_v19 = vpop.f32.mrf.mxu0 }
 0x39c   : > { %4280 = vmatprep.subr.msk.mxu1 %vm1334_vm3, %v2101_v57  ;;  %v2367_v22 = vadd.f32 %v2348_v8, %v2261_v16  ;;  %v2460_v25 = vadd.f32 %v4270_v14, %v2368_v20 }
 0x39d   : > { %v4265_v10 = vpop.f32.mrf.mxu1  ;;  %v4273_v17 = vpop.f32.mrf.mxu0 }
 0x39e   : > { %v2370_v18 = vadd.f32 %v4265_v10, %v2276_v11  ;;  %v2459_v27 = vadd.f32 %v2440_v19, %v2367_v22 }
 0x39f   : > { %4281 = vmatpush3.xpose.msk.msra.mxu1 %vm1334_vm3, %v2101_v57  ;;  %v2358_v15 = vpop.f32.mrf.mxu1  ;;  %v2450_v23 = vpop.f32.mrf.mxu0 }
 0x3a0   : > { %4302 = vmatprep.subr.mxu1 %v4606_v4  ;;  %v2462_v24 = vadd.f32 %v4273_v17, %v2370_v18 }
 0x3a2   : > { %4283 = vmatmul.mubr.msk.f32.vlgmr.msra.gmra.mxu1 %vm1334_vm3, %v5108_v13  ;;  %v2271_v13 = vadd.f32 %v2270_v9, %v2185_v3  ;;  %4288 = vmatprep.subr.mxu0 %v2462_v24 }
 0x3a3   : > { %4285 = vmatprep.mubr.msk.f32.mxu1 %vm1334_vm3, %v1745_v60  ;;  %4289 = vmatpush3.msra.mxu0 %v2462_v24  ;;  %v2734_v24 = vld [vmem:[%s5527_s28] sm:$0xff]  ;;  %s5531_s28 = sld [smem:[#allocation32_spill]] }
 0x3a4   : > { %v2369_v21 = vadd.f32 %v2358_v15, %v2271_v13 }
 0x3a6   : > { %4286 = vmatmul.mubr.msk.f32.gmra.mxu1 %vm1334_vm3, %v1746_v61  ;;  %v2461_v26 = vadd.f32 %v2450_v23, %v2369_v21  ;;  %v3975_v23 = vld [vmem:[%s5528_s3 + $0x8] sm:$0xff] }
 0x3a7   : > { %4310 = vmatprep.mubr.msk.f32.mxu1 %vm4607_vm2, %v4606_v4 }
 0x3a8   : > { %4290 = vmatprep.subr.mxu0 %v2461_v26 }
 0x3a9   : > { %4291 = vmatpush3.msra.mxu0 %v2461_v26  ;;  %v2730_v26 = vld [vmem:[%s5526_s30 + $0x8] sm:$0xff]  ;;  %s5532_s0 = scalar_lea.vmem %s5531_s28, %s4815_s5 }
 0x3aa   : > { %4292 = vmatprep.subr.mxu0 %v2460_v25 }
 0x3ab   : > { %4293 = vmatpush3.msra.mxu0 %v2460_v25  ;;  %v2729_v25 = vld [vmem:[%s5526_s30] sm:$0xff] }
 0x3ac   : > { %4294 = vmatprep.subr.mxu0 %v2459_v27 }
 0x3ad   : > { %4295 = vmatpush3.msra.mxu0 %v2459_v27 }
 0x3ae   : > { %4318 = vmatprep.subr.mxu0 %v4606_v4 }
 0x462   : > { %v4284_v30 = vpop.f32.mrf.mxu1 }
 0x463   : > { %v2573_v31 = vmul.f32 0.70710677, %v4284_v30 }
 0x464   : > { %v2553_v33 = vpop.f32.mrf.mxu1 }
 0x465   : > { %v2572_v34 = vmul.f32 0.70710677, %v2553_v33  ;;  %v2585_v35 = vsel %vm2581_vm4, -1e+08, %v2573_v31  ;;  %v3978_v31 = vld [vmem:[%s5528_s3 + $0x10] sm:$0xff] }
 0x466   : > { %v4287_v37 = vpop.f32.mrf.mxu1  ;;  %v2591_v38 = vsel %vm1043_vm1, %v2585_v35, -inf  ;;  %v2731_v33 = vld [vmem:[%s5526_s30 + $0x10] sm:$0xff] }
 0x467   : > { %2592 = vmax.xlane.f32.xlu1 %v2591_v38  ;;  %v2584_v39 = vsel %vm2580_vm5, -1e+08, %v2572_v34  ;;  %v2575_v43 = vmul.f32 0.70710677, %v4287_v37  ;;  %v3974_v34 = vld [vmem:[%s5529_s9] ss:$0 sm:$0xff] }
 0x468   : > { %v2563_v41 = vpop.f32.mrf.mxu1  ;;  %v2588_v42 = vsel %vm1043_vm1, %v2584_v39, -inf }
 0x469   : > { %v2574_v44 = vmul.f32 0.70710677, %v2563_v41  ;;  %2589 = vmax.xlane.f32.xlu0 %v2588_v42  ;;  %v2587_v47 = vsel %vm2583_vm7, -1e+08, %v2575_v43  ;;  %v3981_v43 = vld [vmem:[%s5528_s3 + $0x18] sm:$0xff] }
 0x46a   : > { %v2597_v48 = vsel %vm1043_vm1, %v2587_v47, -inf }
 0x46b   : > { %v2586_v45 = vsel %vm2582_vm6, -1e+08, %v2574_v44  ;;  %v2732_v44 = vld [vmem:[%s5526_s30 + $0x18] sm:$0xff]  ;;  %s5530_s30 = scalar_lea.vmem %s5434_s14, %s4815_s5 }
 0x46c   : > { %v2594_v46 = vsel %vm1043_vm1, %v2586_v45, -inf }
 0x46d   : > { %2595 = vmax.xlane.f32.xlu0 %v2594_v46 }
 0x471   : > { %2598 = vmax.xlane.f32.xlu0 %v2597_v48 }
 0x4f0   : > { %v2593_v49 = vpop.xlane.xlu1 %2592 }
 0x4f1   : > { %v2601_v50 = vsub.f32 %v2585_v35, %v2593_v49 }
 0x4f2   : > { %v2590_v51 = vpop.xlane.xlu0 %2589 }
 0x4f3   : > { %v2606_v52 = vmul.f32 1.442695, %v2601_v50  ;;  %v2600_v53 = vsub.f32 %v2584_v39, %v2590_v51 }
 0x4f5   : > { %4490 = vpow2.f32 %v2606_v52  ;;  %v2604_v54 = vmul.f32 1.442695, %v2600_v53 }
 0x4f6   : > { %v2596_v55 = vpop.xlane.xlu0 %2595 }
 0x4f7   : > { %4492 = vpow2.f32 %v2604_v54  ;;  %v2602_v56 = vsub.f32 %v2586_v45, %v2596_v55 }
 0x4f9   : > { %v2608_v57 = vmul.f32 1.442695, %v2602_v56 }
 0x4fa   : > { %v2599_v58 = vpop.xlane.xlu0 %2598 }
 0x4fb   : > { %4494 = vpow2.f32 %v2608_v57  ;;  %v2603_v59 = vsub.f32 %v2587_v47, %v2599_v58 }
 0x4fd   : > { %v2610_v60 = vmul.f32 1.442695, %v2603_v59 }
 0x4ff   : > { %4496 = vpow2.f32 %v2610_v60 }
 0x502   : > { %v4491_v61 = vpop.eup %4490 }
 0x503   : > { %v2615_v62 = vsel %vm1043_vm1, %v4491_v61, 0.0 }
 0x504   : > { %v4493_v63 = vpop.eup %4492  ;;  %2616 = vadd.xlane.f32.xlu0 %v2615_v62 }
 0x505   : > { %v2612_v0 = vsel %vm1043_vm1, %v4493_v63, 0.0 }
 0x506   : > { %2613 = vadd.xlane.f32.xlu1 %v2612_v0 }
 0x508   : > { %v4495_v2 = vpop.eup %4494 }
 0x509   : > { %v2618_v3 = vsel %vm1043_vm1, %v4495_v2, 0.0 }
 0x50a   : > { %2619 = vadd.xlane.f32.xlu1 %v2618_v3 }
 0x50c   : > { %v4497_v5 = vpop.eup %4496 }
 0x50d   : > { %v2621_v6 = vsel %vm1043_vm1, %v4497_v5, 0.0 }
 0x50e   : > { %2622 = vadd.xlane.f32.xlu0 %v2621_v6 }
 0x58d   : > { %v2617_v7 = vpop.xlane.xlu0 %2616 }
 0x58e   : > { %4498 = vrcp.f32 %v2617_v7 }
 0x58f   : > { %v2614_v8 = vpop.xlane.xlu1 %2613 }
 0x590   : > { %4500 = vrcp.f32 %v2614_v8 }
 0x593   : > { %v2620_v9 = vpop.xlane.xlu1 %2619 }
 0x594   : > { %4502 = vrcp.f32 %v2620_v9 }
 0x597   : > { %v2623_v10 = vpop.xlane.xlu0 %2622 }
 0x598   : > { %4504 = vrcp.f32 %v2623_v10 }
 0x59b   : > { %v4499_v11 = vpop.eup %4498 }
 0x59c   : > { %v2629_v14 = vmul.f32 %v4499_v11, %v4491_v61 }
 0x59d   : > { %v4501_v12 = vpop.eup %4500 }
 0x59e   : > { %v2628_v13 = vmul.f32 %v4501_v12, %v4493_v63 }
 0x5a0   : > { %4296 = vmatprep.mubr.msk.f32.mxu0 %vm1043_vm1, %v2628_v13  ;;  %v3398_v13 = vld [vmem:[%s4884_s27 + $0x18] sm:$0xff] }
 0x5a1   : > { %v4503_v15 = vpop.eup %4502  ;;  %4297 = vmatmul.mubr.msk.f32.vlgmr.msra.gmra.mxu0 %vm1043_vm1, %v2629_v14  ;;  %v3396_v14 = vld [vmem:[%s4884_s27 + $0x8] sm:$0xff] }
 0x5a2   : > { %v2630_v16 = vmul.f32 %v4503_v15, %v4495_v2  ;;  %v3985_v2 = vld [vmem:[%s5532_s0] ss:$0 sm:$0xff] }
 0x5a3   : > { %v3395_v15 = vld [vmem:[%s4884_s27] sm:$0xff] }
 0x5a4   : > { %4299 = vmatprep.mubr.msk.f32.mxu0 %vm1043_vm1, %v2630_v16  ;;  %v3495_v16 = vld [vmem:[%s4898_s16 + $0x78] sm:$0xff] }
 0x5a5   : > { %v4505_v18 = vpop.eup %4504 }
 0x5a6   : > { %v2631_v19 = vmul.f32 %v4505_v18, %v4497_v5  ;;  %v3494_v18 = vld [vmem:[%s4898_s16 + $0x70] sm:$0xff] }
 0x5a8   : > { %4300 = vmatmul.mubr.msk.f32.gmra.mxu0 %vm1043_vm1, %v2631_v19  ;;  %v3493_v19 = vld [vmem:[%s4898_s16 + $0x68] sm:$0xff] }
 0x5a9   : > { %4326 = vmatprep.mubr.msk.f32.mxu0 %vm4607_vm2, %v4606_v4 }
 0x661   : > { %v5207_v20 = vpop.f32.mrf.mxu0 }
 0x663   : > { %v5209_v21 = vpop.f32.mrf.mxu0 }
 0x668   : > { %v4301_v17 = vpop.f32.mrf.mxu0 }
 0x669   : > { %4303 = vmatpush3.msra.mxu1 %v4301_v17  ;;  %4319 = vmatpush3.msra.mxu0 %v4301_v17 }
 0x66a   : > { %v2720_v22 = vpop.f32.mrf.mxu0  ;;  %4304 = vmatprep.subr.mxu1 %v4606_v4  ;;  %4320 = vmatprep.subr.mxu0 %v4606_v4 }
 0x66b   : > { %4305 = vmatpush3.msra.mxu1 %v2720_v22  ;;  %4321 = vmatpush3.msra.mxu0 %v2720_v22 }
 0x66c   : > { %4306 = vmatprep.subr.mxu1 %v4606_v4  ;;  %4322 = vmatprep.subr.mxu0 %v4606_v4 }
 0x66d   : > { %4307 = vmatpush3.msra.mxu1 %v5207_v20  ;;  %4323 = vmatpush3.msra.mxu0 %v5207_v20 }
 0x66e   : > { %4308 = vmatprep.subr.mxu1 %v4606_v4  ;;  %4324 = vmatprep.subr.mxu0 %v4606_v4 }
 0x66f   : > { %4309 = vmatpush3.msra.mxu1 %v5209_v21  ;;  %4325 = vmatpush3.msra.mxu0 %v5209_v21 }
 0x670   : > { %4311 = vmatmul.mubr.msk.f32.vlgmr.msra.gmra.mxu1 %vm1043_vm1, %v2734_v24  ;;  %4327 = vmatmul.mubr.msk.f32.vlgmr.msra.gmra.mxu0 %vm1043_vm1, %v3975_v23  ;;  %v3488_v24 = vld [vmem:[%s4898_s16 + $0x40] sm:$0xff]  ;;  %v3487_v23 = vld [vmem:[%s4898_s16 + $0x38] sm:$0xff] }
 0x671   : > { %4313 = vmatprep.subr.mxu1 %v4606_v4  ;;  %4315 = vmatprep.mubr.msk.f32.mxu1 %vm4607_vm2, %v4606_v4 }
 0x672   : > { %4345 = vmatprep.subr.mxu0 %v4606_v4  ;;  %4347 = vmatprep.mubr.msk.f32.mxu0 %vm4607_vm2, %v4606_v4 }
 0x673   : > { %4314 = vmatpush3.msra.mxu1 %v2729_v25  ;;  %4346 = vmatpush3.msra.mxu0 %v2731_v33  ;;  %v3486_v25 = vld [vmem:[%s4898_s16 + $0x30] sm:$0xff] }
 0x674   : > { %4329 = vmatprep.subr.mxu1 %v4606_v4  ;;  %4350 = vmatprep.subr.mxu0 %v4606_v4 }
 0x730   : > { %v2804_v27 = vpop.f32.mrf.mxu1  ;;  %v2959_v28 = vpop.f32.mrf.mxu0 }
 0x731   : > { %4316 = vmatmul.mubr.msk.f32.vlgmr.msra.gmra.mxu1 %vm1334_vm3, %v2804_v27  ;;  %v3484_v27 = vld [vmem:[%s4898_s16 + $0x20] sm:$0xff] }
 0x732   : > { %4330 = vmatpush3.msra.mxu1 %v2730_v26  ;;  %4331 = vmatprep.mubr.msk.f32.mxu1 %vm4607_vm2, %v4606_v4  ;;  %v4312_v29 = vpop.f32.mrf.mxu1  ;;  %v4328_v30 = vpop.f32.mrf.mxu0  ;;  %v3485_v26 = vld [vmem:[%s4898_s16 + $0x28] sm:$0xff] }
 0x733   : > { %4334 = vmatprep.subr.mxu1 %v4606_v4 }
 0x735   : > { %4332 = vmatmul.mubr.msk.f32.vlgmr.msra.gmra.mxu1 %vm1334_vm3, %v2959_v28  ;;  %v3483_v28 = vld [vmem:[%s4898_s16 + $0x18] sm:$0xff] }
 0x736   : > { %4335 = vmatpush3.msra.mxu1 %v4301_v17  ;;  %4342 = vmatprep.mubr.msk.f32.mxu1 %vm4607_vm2, %v4606_v4 }
 0x737   : > { %4336 = vmatprep.subr.mxu1 %v4606_v4 }
 0x738   : > { %4337 = vmatpush3.msra.mxu1 %v2720_v22 }
 0x739   : > { %4338 = vmatprep.subr.mxu1 %v4606_v4 }
 0x73a   : > { %4339 = vmatpush3.msra.mxu1 %v5207_v20 }
 0x73b   : > { %4340 = vmatprep.subr.mxu1 %v4606_v4 }
 0x73c   : > { %4341 = vmatpush3.msra.mxu1 %v5209_v21 }
 0x73d   : > { %4343 = vmatmul.mubr.msk.f32.vlgmr.msra.gmra.mxu1 %vm1043_vm1, %v3978_v31  ;;  %4361 = vmatprep.subr.mxu1 %v4606_v4 }
 0x73e   : > { %4363 = vmatprep.mubr.msk.f32.mxu1 %vm4607_vm2, %v4606_v4  ;;  %4362 = vmatpush3.msra.mxu1 %v2732_v44 }
 0x73f   : > { %4366 = vmatprep.subr.mxu1 %v4606_v4 }
 0x7f1   : > { %v2877_v35 = vpop.f32.mrf.mxu1 }
 0x7f2   : > { %v2887_v37 = vadd.f32 %v3974_v34, %v2877_v35  ;;  %v3986_v34 = vld [vmem:[%s5534_s4] ss:$0 sm:$0xff] }
 0x7f3   : > { %v4317_v36 = vpop.f32.mrf.mxu1 }
 0x7f4   : > { %v3987_v36 = vld [vmem:[%s1016_s29] ss:$0 sm:$0xff] }
 0x7f5   : > { %v3032_v38 = vpop.f32.mrf.mxu1 }
 0x7f6   : > { %v3036_v39 = vadd.f32 %v3032_v38, %v2887_v37 }
 0x7f7   : > { %v4333_v40 = vpop.f32.mrf.mxu1 }
 0x7f8   : > { %v3481_v40 = vld [vmem:[%s4898_s16 + $0x8] sm:$0xff] }
 0x7fd   : > { %v3108_v41 = vpop.f32.mrf.mxu1 }
 0x7fe   : > { %4348 = vmatmul.mubr.msk.f32.vlgmr.msra.gmra.mxu0 %vm1334_vm3, %v3108_v41  ;;  %v3480_v41 = vld [vmem:[%s4898_s16] sm:$0xff] }
 0x7ff   : > { %4351 = vmatpush3.msra.mxu0 %v4301_v17  ;;  %v4344_v42 = vpop.f32.mrf.mxu1  ;;  %4358 = vmatprep.mubr.msk.f32.mxu0 %vm4607_vm2, %v4606_v4  ;;  %v3490_v17 = vld [vmem:[%s4898_s16 + $0x50] sm:$0xff] }
 0x800   : > { %4352 = vmatprep.subr.mxu0 %v4606_v4  ;;  %v3988_v42 = vld [vmem:[%s1024_s8] ss:$0 sm:$0xff] }
 0x801   : > { %4353 = vmatpush3.msra.mxu0 %v2720_v22  ;;  %v3489_v22 = vld [vmem:[%s4898_s16 + $0x48] sm:$0xff] }
 0x802   : > { %4354 = vmatprep.subr.mxu0 %v4606_v4 }
 0x803   : > { %4355 = vmatpush3.msra.mxu0 %v5207_v20  ;;  %v3492_v20 = vld [vmem:[%s4898_s16 + $0x60] sm:$0xff] }
 0x804   : > { %4356 = vmatprep.subr.mxu0 %v4606_v4 }
 0x805   : > { %4357 = vmatpush3.msra.mxu0 %v5209_v21  ;;  %v3491_v21 = vld [vmem:[%s4898_s16 + $0x58] sm:$0xff] }
 0x806   : > { %4359 = vmatmul.mubr.msk.f32.vlgmr.msra.gmra.mxu0 %vm1043_vm1, %v3981_v43  ;;  %4377 = vmatprep.subr.mxu0 %v4606_v4 }
 0x807   : > { %4409 = vmatprep.mubr.msk.f32.mxu0 %vm4607_vm2, %v4606_v4  ;;  %4378 = vmatpush3.msra.mxu0 %v3495_v16 }
 0x808   : > { %4379 = vmatprep.subr.mxu0 %v4606_v4 }
 0x809   : > { %4380 = vmatpush3.msra.mxu0 %v3494_v18 }
 0x80a   : > { %4381 = vmatprep.subr.mxu0 %v4606_v4 }
 0x80b   : > { %4382 = vmatpush3.msra.mxu0 %v3493_v19 }
 0x80c   : > { %4383 = vmatprep.subr.mxu0 %v4606_v4 }
 0x80d   : > { %4384 = vmatpush3.msra.mxu0 %v3492_v20 }
 0x80e   : > { %4385 = vmatprep.subr.mxu0 %v4606_v4 }
 0x80f   : > { %4386 = vmatpush3.msra.mxu0 %v3491_v21 }
 0x810   : > { %4387 = vmatprep.subr.mxu0 %v4606_v4 }
 0x811   : > { %4388 = vmatpush3.msra.mxu0 %v3490_v17 }
 0x812   : > { %4389 = vmatprep.subr.mxu0 %v4606_v4 }
 0x813   : > { %4390 = vmatpush3.msra.mxu0 %v3489_v22 }
 0x814   : > { %4391 = vmatprep.subr.mxu0 %v4606_v4 }
 0x815   : > { %4392 = vmatpush3.msra.mxu0 %v3488_v24 }
 0x816   : > { %4393 = vmatprep.subr.mxu0 %v4606_v4 }
 0x817   : > { %4394 = vmatpush3.msra.mxu0 %v3487_v23 }
 0x818   : > { %4395 = vmatprep.subr.mxu0 %v4606_v4 }
 0x819   : > { %4396 = vmatpush3.msra.mxu0 %v3486_v25 }
 0x81a   : > { %4397 = vmatprep.subr.mxu0 %v4606_v4 }
 0x81b   : > { %4398 = vmatpush3.msra.mxu0 %v3485_v26 }
 0x81c   : > { %4399 = vmatprep.subr.mxu0 %v4606_v4 }
 0x81d   : > { %4400 = vmatpush3.msra.mxu0 %v3484_v27 }
 0x81e   : > { %4401 = vmatprep.subr.mxu0 %v4606_v4 }
 0x81f   : > { %4402 = vmatpush3.msra.mxu0 %v3483_v28 }
 0x820   : > { %4403 = vmatprep.subr.mxu0 %v4606_v4 }
 0x8be   : > { %v3181_v45 = vpop.f32.mrf.mxu0 }
 0x8bf   : > { %v3185_v46 = vadd.f32 %v3181_v45, %v3036_v39  ;;  %v3482_v39 = vld [vmem:[%s4898_s16 + $0x10] sm:$0xff]  ;;  %s5537_s16 = sld [smem:[#allocation9_spill]] }
 0x8c0   : > { %v4349_v47 = vpop.f32.mrf.mxu0  ;;  %4404 = vmatpush3.msra.mxu0 %v3482_v39 }
 0x8c1   : > { %4405 = vmatprep.subr.mxu0 %v4606_v4  ;;  %v3990_v47 = vld [vmem:[%s1032_s15] ss:$0 sm:$0xff] }
 0x8c2   : > { %4406 = vmatpush3.msra.mxu0 %v3481_v40 }
 0x8c3   : > { %4407 = vmatprep.subr.mxu0 %v4606_v4 }
 0x8c4   : > { %4408 = vmatpush3.msra.mxu0 %v3480_v41 }
 0x8c5   : > { %p3991_p1 = scmp.ne.s32.totalorder %s5537_s16, 1 }
 0x8c6   : > { %v3257_v48 = vpop.f32.mrf.mxu0  ;;  %s5538_s8 = sld [smem:[#allocation37_spill]] (!%p3991_p1) }
 0x8c7   : > { %4364 = vmatmul.mubr.msk.f32.vlgmr.msra.gmra.mxu1 %vm1334_vm3, %v3257_v48  ;;  %s5539_s20 = sld [smem:[#allocation38_spill]] (!%p3991_p1) }
 0x8c8   : > { %v4360_v49 = vpop.f32.mrf.mxu0  ;;  %4374 = vmatprep.mubr.msk.f32.mxu1 %vm4607_vm2, %v4606_v4  ;;  %4367 = vmatpush3.msra.mxu1 %v3398_v13 }
 0x8c9   : > { %4368 = vmatprep.subr.mxu1 %v4606_v4 }
 0x987   : > { %v3330_v50 = vpop.f32.mrf.mxu1 }
 0x988   : > { %v3334_v51 = vadd.f32 %v3330_v50, %v3185_v46 }
 0x989   : > { %v4365_v52 = vpop.f32.mrf.mxu1 }
 0x98a   : > { %v3335_v53 = vadd.f32 %v3334_v51, %v4902_v1  ;;  %v3984_v1 = vld [vmem:[%s5530_s30] ss:$0 sm:$0xff] }
 0x98c   : > { %v3338_v54 = vsel %vm1043_vm1, %v3335_v53, 0.0 }
 0x98d   : > { %3339 = vadd.xlane.f32.xlu1 %v3338_v54 }
 0xa16   : > { %v3340_v55 = vpop.xlane.xlu1 %3339 }
 0xa17   : > { %v3341_v56 = vmul.f32 0.03125, %v3340_v55 }
 0xa19   : > { %v3342_v57 = vsub.f32 %v3335_v53, %v3341_v56 }
 0xa1b   : > { %v3343_v58 = vmul.f32 %v3342_v57, %v3342_v57 }
 0xa1d   : > { %v3344_v59 = vsel %vm1043_vm1, %v3343_v58, 0.0 }
 0xa1e   : > { %3345 = vadd.xlane.f32.xlu0 %v3344_v59 }
 0xaa7   : > { %v3346_v60 = vpop.xlane.xlu0 %3345 }
 0xaa8   : > { %v3347_v61 = vmul.f32 0.03125, %v3346_v60 }
 0xaaa   : > { %v3348_v62 = vadd.f32 1e-05, %v3347_v61 }
 0xaac   : > { %4506 = vrsqrt.f32 %v3348_v62 }
 0xab9   : > { %v4507_v63 = vpop.eup %4506 }
 0xaba   : > { %v3350_v0 = vmul.f32 %v4507_v63, %v3342_v57 }
 0xabc   : > { %v3357_v3 = vmul.f32 %v3984_v1, %v3350_v0 }
 0xabe   : > { %v3364_v5 = vadd.f32 %v3985_v2, %v3357_v3 }
 0xac0   : > { %v3365_v6 = vadd.f32 %v3364_v5, %v4970_v32  ;;  %v3397_v32 = vld [vmem:[%s4884_s27 + $0x10] sm:$0xff] }
 0xac1   : > { %4369 = vmatpush3.msra.mxu1 %v3397_v32 }
 0xac2   : > { %v3368_v7 = vsel %vm1043_vm1, %v3365_v6, 0.0  ;;  %4370 = vmatprep.subr.mxu1 %v4606_v4 }
 0xac3   : > { %3369 = vadd.xlane.f32.xlu1 %v3368_v7  ;;  %4371 = vmatpush3.msra.mxu1 %v3396_v14 }
 0xac4   : > { %4372 = vmatprep.subr.mxu1 %v4606_v4 }
 0xac5   : > { %4373 = vmatpush3.msra.mxu1 %v3395_v15 }
 0xb4c   : > { %v3370_v8 = vpop.xlane.xlu1 %3369 }
 0xb4d   : > { %v3371_v9 = vmul.f32 0.03125, %v3370_v8 }
 0xb4f   : > { %v3372_v10 = vsub.f32 %v3365_v6, %v3371_v9 }
 0xb51   : > { %v3373_v11 = vmul.f32 %v3372_v10, %v3372_v10 }
 0xb53   : > { %v3374_v12 = vsel %vm1043_vm1, %v3373_v11, 0.0 }
 0xb54   : > { %3375 = vadd.xlane.f32.xlu0 %v3374_v12 }
 0xbdd   : > { %v3376_v29 = vpop.xlane.xlu0 %3375 }
 0xbde   : > { %v3377_v30 = vmul.f32 0.03125, %v3376_v29 }
 0xbe0   : > { %v3378_v31 = vadd.f32 1e-08, %v3377_v30 }
 0xbe2   : > { %4508 = vrsqrt.f32 %v3378_v31 }
 0xbef   : > { %v4509_v33 = vpop.eup %4508 }
 0xbf0   : > { %v3380_v35 = vmul.f32 %v4509_v33, %v3372_v10 }
 0xbf2   : > { %v3387_v37 = vmul.f32 %v3986_v34, %v3380_v35 }
 0xbf4   : > { %v3394_v38 = vadd.f32 %v3987_v36, %v3387_v37 }
 0xbf6   : > { %4375 = vmatmul.mubr.msk.f32.vlgmr.msra.gmra.mxu1 %vm1043_vm1, %v3394_v38 }
 0xcb6   : > { %v3475_v43 = vpop.f32.mrf.mxu1 }
 0xcb7   : > { %v3476_v44 = vadd.f32 %v3988_v42, %v3475_v43 }
 0xcb8   : > { %v4376_v45 = vpop.f32.mrf.mxu1 }
 0xcb9   : > { %v3479_v46 = vmax.f32 %v3476_v44, 0.0 }
 0xcbb   : > { %4410 = vmatmul.mubr.f32.vlgmr.msra.gmra.mxu0 %v3479_v46 }
 0xd7a   : > { %3577 = sbr.rel (%p3991_p1) target bundleno = 3764 (0xeb4), region = 124 }
 0xd7b   : > { %v3569_v48 = vpop.f32.mrf.mxu0 }
 0xd7c   : > { %v3570_v49 = vadd.f32 %v3990_v47, %v3569_v48 }
 0xd7d   : > { %v4411_v4 = vpop.f32.mrf.mxu0 }
 0xd7e   : > { %3573 = vst.msk [vmem:[#allocation2] sm:$0xff] %vm1043_vm1, %v3570_v49 }
 0xd7f   : > { %v3580_v50 = vsel %vm1043_vm1, %v3570_v49, 0.0  ;;  %v3992_v60 = vld [vmem:[%s5538_s8] ss:$0 sm:$0xff] }
 0xd80   : > { %3581 = vadd.xlane.f32.xlu0 %v3580_v50  ;;  %v3993_v62 = vld [vmem:[%s5539_s20] ss:$0 sm:$0xff] }
 0xe09   : > { %v3582_v51 = vpop.xlane.xlu0 %3581 }
 0xe0a   : > { %v3583_v52 = vmul.f32 0.03125, %v3582_v51 }
 0xe0c   : > { %v3584_v53 = vsub.f32 %v3570_v49, %v3583_v52 }
 0xe0e   : > { %v3585_v54 = vmul.f32 %v3584_v53, %v3584_v53 }
 0xe10   : > { %v3586_v55 = vsel %vm1043_vm1, %v3585_v54, 0.0 }
 0xe11   : > { %3587 = vadd.xlane.f32.xlu0 %v3586_v55 }
 0xe9a   : > { %v3588_v56 = vpop.xlane.xlu0 %3587 }
 0xe9b   : > { %v3589_v57 = vmul.f32 0.03125, %v3588_v56 }
 0xe9d   : > { %v3590_v58 = vadd.f32 1e-08, %v3589_v57 }
 0xe9f   : > { %4510 = vrsqrt.f32 %v3590_v58 }
 0xeac   : > { %v4511_v59 = vpop.eup %4510 }
 0xead   : > { %v3592_v61 = vmul.f32 %v4511_v59, %v3584_v53 }
 0xeaf   : > { %v3599_v63 = vmul.f32 %v3992_v60, %v3592_v61 }
 0xeb1   : > { %v3606_v1 = vadd.f32 %v3993_v62, %v3599_v63 }
 0xeb3   : > { %3607 = vst.msk [vmem:[%s962_s25] sm:$0xff] %vm1043_vm1, %v3606_v1 }
 0xeb4 PF: > { %s5540_s28 = sld [smem:[#allocation10_spill]]  ;;  %s3622_s9 = sshll.u32 %s962_s25, 4  ;;  %s3623_s9 = int_to_ptr.vmem [resolvable:$true] %s3622_s9 }
 0xeb5   : > { %s5541_s0 = sld [smem:[#allocation7_spill]]  ;;  %s4512_s29 = scalar_lea.vmem %s3623_s9, 128 }
 0xeb6   : > { %s5543_s19 = sld [smem:[#allocation39_spill]]  ;;  %p4513_p2 = scmp.ne.s32.totalorder %s3623_s9, %s4512_s29 }
 0xeb7   : > { %s4611_s10 = smov [#allocation3]  }
 0xeb8   : > { %p4514_p4 = pnand %p4513_p2, %p4786_p3  ;;  %s4516_s12 = sshll.u32 %s4611_s10, 4  ;;  %s4517_s12 = int_to_ptr.vmem [resolvable:$false] %s4516_s12 }
 0xeb9   : > { %s4518_s16 = scalar_lea.vmem %s4517_s12, 256  ;;  %p4519_p6 = scmp.lt.s32.totalorder %s3623_s9, %s4517_s12 }
 0xeba   : > { %s3995_s26 = sshll.u32 %s5540_s28, 7  ;;  %p4515_p5 = pneg %p4514_p4 }
 0xebb   : > { %s5544_s21 = sand.u32 1, %s5541_s0   ;;  %p4520_p7 = scmp.lt.s32.totalorder %s4518_s16, %s4512_s29 }
 0xebc   : > { %s3620_s24 = scalar_lea.hbm %s5543_s19, %s3995_s26  ;;  %s3609_s7 = scalar_lea.sflag [#allocation4], %s5544_s21 }
 0xebd   : > { %p4521_p8 = por %p4520_p7, %p4519_p6 }
 0xebf   : > { %p4522_p10 = pnand %p4521_p8, %p4515_p5 }
 0xec1   : > { %4525 = shalt.err (!%p4522_p10)
}
 0xec2   : > { %s4526_s15 = scalar_lea.hbm %s3620_s24, 128  ;;  %s4530_s5 = scalar_lea.hbm %s5543_s19, 256 }
 0xec3   : > { %p4527_p11 = scmp.ne.s32.totalorder %s3620_s24, %s4526_s15  ;;  %p4531_p0 = scmp.lt.s32.totalorder %s3620_s24, %s5543_s19 }
 0xec4   : > { %p4532_p1 = scmp.lt.s32.totalorder %s4530_s5, %s4526_s15 }
 0xec5   : > { %p4528_p12 = pnand %p4527_p11, %p4786_p3 }
 0xec6   : > { %p4533_p2 = por %p4532_p1, %p4531_p0 }
 0xec7   : > { %p4529_p13 = pneg %p4528_p12 }
 0xec9   : > { %p4534_p4 = pnand %p4533_p2, %p4529_p13 }
 0xecb   : > { %4537 = shalt.err (!%p4534_p4)
}
 0xecc   : > { %4412 = dma.vmem_to_hbm [thread:$0]  (%p4786_p3), %s3623_s9, 128, %s3620_s24, %s3609_s7  }
 0xecd PF: > { %s5545_s1 = sld [smem:[#allocation13_spill]] }
 0xece   : > { %s5546_s20 = sld [smem:[#allocation6_spill]] }
 0xed3   : > { %p4418_p5 = scmp.ge.s32.totalorder %s5545_s1, 2 }
 0xed4   : > { %s3634_s0 = sand.u32 1, %s5546_s20  }
 0xed5   : > { %p4415_p6 = pnand %p4418_p5, %p4796_p9  ;;  %s3635_s26 = scalar_lea.sflag [#allocation4], %s3634_s0 }
 0xed7   : > { %p4416_p7 = pneg %p4415_p6 }
 0xed9   : > { %4571 = dma.done.wait (%p4416_p7), %s3635_s26, 128  }
 0xeda   : > { %4573 = vsyncadd (%p4416_p7), %s3635_s26, 4294967168  ;;  %s37_s0 = sadd.s32 1, %s5545_s1   ;;  %s5548_s5 = sld [smem:[#allocation7_spill]] }
 0xedb   : > { %p34_p8 = scmp.ge.s32.totalorder %s37_s0, 6   ;;  %s5549_s26 = sld [smem:[#allocation8_spill]] }
 0xedc   : > { %s5550_s27 = sld [smem:[#allocation18_spill]] }
 0xedd   : > { %s5551_s28 = sld [smem:[#allocation11_spill]]  ;;  %36 = sbr.rel (!%p34_p8) target bundleno = 26 (0x1a), region = 219 }
 0xede   : > { %s5552_s6 = sld [smem:[#allocation12_spill]] }
 0xedf   : > { %s5553_s2 = sld [smem:[#allocation14_spill]] }
 0xee0   : > { %s5554_s29 = sld [smem:[#allocation16_spill]] }
 0xee2   :  { %3640 = vsyncpa [#allocation4], 1 }
 0xee3   :  { %3642 = vsyncpa [#allocation4 + $0x1], 1 }

</bundles_post_ra>
